<compile_context>
chip_gen: v7x
topology: tpu7x:2x2x1
jax: 0.10.0
libtpu: 0.0.40
codegen_flags: <defaults>
</compile_context>

<pallas_src>
import functools

import jax
import jax.numpy as jnp
from jax.experimental import pallas as pl
from jax.experimental.pallas import tpu as pltpu


# ----------------------------------------------------------------------------
# One-time parameter folding / packing (keep off the per-call path)
# ----------------------------------------------------------------------------
def prepare_params(params):
    H = int(params["hidden"])
    V, _E = params["embedding"].shape
    F = int(params["dec_w_out"].shape[1])
    C = ((max(4 * H, 3 * H, F) + 127) // 128) * 128          # pack lane width

    def split3(w):
        return w[:, 0:H], w[:, H:2 * H], w[:, 2 * H:3 * H]

    e_wxr, e_wxz, e_wxn = split3(params["enc_w_ih"])
    e_whr, e_whz, e_whn = split3(params["enc_w_hh"])
    e_bir, e_biz, e_bin = split3(params["enc_b_ih"])
    e_bhr, e_bhz, e_bhn = split3(params["enc_b_hh"])
    d_wxr, d_wxz, d_wxn = split3(params["dec_w_ih"])
    d_whr, d_whz, d_whn = split3(params["dec_w_hh"])
    d_bir, d_biz, d_bin = split3(params["dec_b_ih"])
    d_bhr, d_bhz, d_bhn = split3(params["dec_b_hh"])
    w_out = params["dec_w_out"]                               # [H, F]
    b_out = params["dec_b_out"]                               # [1, F]

    # Encoder: fold embedding + (b_ih + b_hh) r/z biases + b_in into the one-hot x-table.
    Vp = ((V + 7) // 8) * 8                                   # sublane-align vocab
    emb = jnp.zeros((Vp, params["embedding"].shape[1]), jnp.float32)
    emb = emb.at[:V, :].set(params["embedding"])
    zeros_h = jnp.zeros((1, H), jnp.float32)

    enc_xtab = jnp.concatenate([emb @ e_wxr + (e_bir + e_bhr),
                                emb @ e_wxz + (e_biz + e_bhz),
                                emb @ e_wxn + e_bin], axis=1)             # [Vp, 3H]
    enc_wh = jnp.concatenate([e_whr, e_whz, e_whn], axis=1)               # [H, 3H]
    enc_bh = jnp.concatenate([zeros_h, zeros_h, e_bhn], axis=1)           # [1, 3H]

    # Decoder step 0 (x = bos): un-folded x-side.
    dec_wx = jnp.concatenate([d_wxr, d_wxz, d_wxn], axis=1)               # [F, 3H]
    dec_bx = jnp.concatenate([d_bir + d_bhr, d_biz + d_bhz, d_bin], axis=1)
    dec_wh0 = jnp.concatenate([d_whr, d_whz, d_whn], axis=1)              # [H, 3H]
    dec_bh0 = jnp.concatenate([zeros_h, zeros_h, d_bhn], axis=1)

    # Decoder steps >= 1: fold x_t = h_{t-1} @ Wout + b_out into the recurrence.
    dec_wf = jnp.concatenate([d_whr + w_out @ d_wxr,
                              d_whz + w_out @ d_wxz,
                              w_out @ d_wxn,
                              d_whn], axis=1)                             # [H, 4H]
    dec_bf = jnp.concatenate([d_bir + d_bhr + b_out @ d_wxr,
                              d_biz + d_bhz + b_out @ d_wxz,
                              d_bin + b_out @ d_wxn,
                              d_bhn], axis=1)                             # [1, 4H]

    bias_blk = jnp.concatenate(
        [jnp.zeros((1, C), jnp.float32).at[:, :x.shape[1]].set(x)
         for x in (enc_bh, dec_bx, dec_bh0, dec_bf, b_out)], axis=0)      # [5, C]

    # Pack everything into a single f32 slab; every block starts on an 8-row boundary.
    blocks = [("enc_xtab", enc_xtab), ("enc_wh", enc_wh), ("dec_wx", dec_wx),
              ("dec_wh0", dec_wh0), ("dec_wf", dec_wf), ("w_out", w_out),
              ("bias", bias_blk)]
    layout, slabs, row = {}, [], 0
    for name, blk in blocks:
        nr = ((blk.shape[0] + 7) // 8) * 8
        slab = jnp.zeros((nr, C), jnp.float32).at[:blk.shape[0], :blk.shape[1]].set(blk)
        slabs.append(slab)
        layout[name] = row
        row += nr
    w_pack = jnp.concatenate(slabs, axis=0)                               # [R, C]
    meta = dict(H=H, F=F, Vp=Vp, layout=layout)
    return w_pack, meta


# ----------------------------------------------------------------------------
# Fused Seq2Seq kernel (single invocation, everything resident in VMEM)
# ----------------------------------------------------------------------------
def _seq2seq_kernel(ids_ref, bos_ref, w_ref, out_ref, *, n_frame, H, Vp, layout):
    f32 = jnp.float32
    B, n_tok = ids_ref.shape
    F = bos_ref.shape[-1]
    C = w_ref.shape[-1]

    # ---- hoist all weight blocks / biases once (static, sublane-aligned ref slices) ----
    def load(name, nrows):
        r = layout[name]
        return w_ref[r:r + nrows, :]

    enc_xtab = load("enc_xtab", Vp)                    # [Vp, C] (3H used)
    enc_wh = load("enc_wh", H)                         # [H,  C] (3H used)
    dec_wx = load("dec_wx", F)                         # [F,  C] (3H used)
    dec_wh0 = load("dec_wh0", H)                       # [H,  C] (3H used)
    dec_wf = load("dec_wf", H)                         # [H,  C] (4H used)
    w_out = load("w_out", H)[:, 0:F]                   # [H, F]
    rb = layout["bias"]
    enc_bh = jnp.broadcast_to(w_ref[rb + 0:rb + 1, :], (B, C))
    dec_bx = jnp.broadcast_to(w_ref[rb + 1:rb + 2, :], (B, C))
    dec_bh0 = jnp.broadcast_to(w_ref[rb + 2:rb + 3, :], (B, C))
    dec_bf = jnp.broadcast_to(w_ref[rb + 3:rb + 4, :], (B, C))
    b_out = jnp.broadcast_to(w_ref[rb + 4:rb + 5, :][:, 0:F], (B, F))

    # PyTorch GRU semantics (r/z biases pre-fused, b_in folded into gx, b_hn into gh):
    #   r = sigmoid(gx_r + gh_r); z = sigmoid(gx_z + gh_z)
    #   n = tanh(gx_n + r * gh_n); h' = (1 - z) * n + z * h
    def gru_step(gx, gh, h):
        r = jax.nn.sigmoid(gx[:, 0:H] + gh[:, 0:H])
        z = jax.nn.sigmoid(gx[:, H:2 * H] + gh[:, H:2 * H])
        n = jnp.tanh(gx[:, 2 * H:3 * H] + r * gh[:, 2 * H:3 * H])
        return (1.0 - z) * n + z * h

    # ---- encoder: all x-side work (embedding + x-gates + biases) off the serial chain --
    ids = ids_ref[...]                                              # [B, n_tok] int32
    iota_v = jax.lax.broadcasted_iota(jnp.int32, (B, Vp), 1)
    gx_enc = [jnp.dot((ids[:, t:t + 1] == iota_v).astype(f32), enc_xtab,
                      preferred_element_type=f32)                    # [B, C]
              for t in range(n_tok)]

    h = jnp.zeros((B, H), f32)
    for t in range(n_tok):                                          # chain: 1 matmul/step
        gh = enc_bh if t == 0 else (
            jnp.dot(h, enc_wh, preferred_element_type=f32) + enc_bh)
        h = gru_step(gx_enc[t], gh, h)

    # ---- decoder: folded recurrence (1 matmul/step); y off the dependency chain --------
    gx0 = jnp.dot(bos_ref[...], dec_wx, preferred_element_type=f32) + dec_bx  # off-chain
    ys = []
    for f in range(n_frame):
        if f == 0:
            gh = jnp.dot(h, dec_wh0, preferred_element_type=f32) + dec_bh0
            h = gru_step(gx0, gh, h)
        else:
            g = jnp.dot(h, dec_wf, preferred_element_type=f32) + dec_bf       # [B, 4H]
            r = jax.nn.sigmoid(g[:, 0:H])
            z = jax.nn.sigmoid(g[:, H:2 * H])
            n = jnp.tanh(g[:, 2 * H:3 * H] + r * g[:, 3 * H:4 * H])
            h = (1.0 - z) * n + z * h
        ys.append(jnp.dot(h, w_out, preferred_element_type=f32) + b_out)      # off-chain

    out_ref[...] = jnp.concatenate(ys, axis=1)          # single lane-dense [B, n_frame*F]


# ----------------------------------------------------------------------------
# Wrapper: 3 inputs (ids, bos, packed params), one pallas_call, pure reshape out
# ----------------------------------------------------------------------------
def seq2seq_forward(prepared, onomatopes, bos_embeddings, n_frame):
    w_pack, meta = prepared
    B, _T = onomatopes.shape
    F = meta["F"]
    bos = bos_embeddings[:, 0, :].astype(jnp.float32)               # [B, F]

    kernel = functools.partial(_seq2seq_kernel, n_frame=int(n_frame), H=meta["H"],
                               Vp=meta["Vp"], layout=meta["layout"])
    vmem = lambda: pl.BlockSpec(memory_space=pltpu.MemorySpace.VMEM)

    out_flat = pl.pallas_call(
        kernel,
        out_shape=jax.ShapeDtypeStruct((B, int(n_frame) * F), jnp.float32),
        in_specs=[vmem(), vmem(), vmem()],
        out_specs=vmem(),
    )(onomatopes.astype(jnp.int32), bos, w_pack)

    # frame f occupies columns [f*F, (f+1)*F): pure reshape (no transpose).
    return out_flat.reshape(B, int(n_frame), F)


# ----------------------------------------------------------------------------
# Pure-JAX reference (PyTorch GRU semantics on the original fused-gate weights)
# ----------------------------------------------------------------------------
def _gru_cell_ref(x, h, w_ih, w_hh, b_ih, b_hh, hidden):
    gx = jnp.dot(x, w_ih) + b_ih
    gh = jnp.dot(h, w_hh) + b_hh
    r = jax.nn.sigmoid(gx[:, 0 * hidden:1 * hidden] + gh[:, 0 * hidden:1 * hidden])
    z = jax.nn.sigmoid(gx[:, 1 * hidden:2 * hidden] + gh[:, 1 * hidden:2 * hidden])
    n = jnp.tanh(gx[:, 2 * hidden:3 * hidden] + r * gh[:, 2 * hidden:3 * hidden])
    return (1.0 - z) * n + z * h


def seq2seq_reference(params, onomatopes, bos_embeddings, n_frame):
    H = params["hidden"]
    emb = jnp.take(params["embedding"], onomatopes, axis=0)         # [B, T, E]

    def enc_step(h, x):
        return _gru_cell_ref(x, h, params["enc_w_ih"], params["enc_w_hh"],
                             params["enc_b_ih"], params["enc_b_hh"], H), None

    h0 = jnp.zeros((emb.shape[0], H), jnp.float32)
    h_enc, _ = jax.lax.scan(enc_step, h0, jnp.transpose(emb, (1, 0, 2)))

    def dec_step(carry, _):
        x, h = carry
        h_new = _gru_cell_ref(x, h, params["dec_w_ih"], params["dec_w_hh"],
                              params["dec_b_ih"], params["dec_b_hh"], H)
        y = jnp.dot(h_new, params["dec_w_out"]) + params["dec_b_out"]
        return (y, h_new), y

    bos = bos_embeddings[:, 0, :]
    (_, _), ys = jax.lax.scan(dec_step, (bos, h_enc), None, length=n_frame)
    return jnp.transpose(ys, (1, 0, 2))


def init_params(key, vocab, embed, hidden, n_fbin):
    ks = jax.random.split(key, 10)
    s = 0.1
    return {
        "hidden": hidden,
        "embedding": s * jax.random.normal(ks[0], (vocab, embed), jnp.float32),
        "enc_w_ih": s * jax.random.normal(ks[1], (embed, 3 * hidden), jnp.float32),
        "enc_w_hh": s * jax.random.normal(ks[2], (hidden, 3 * hidden), jnp.float32),
        "enc_b_ih": s * jax.random.normal(ks[3], (1, 3 * hidden), jnp.float32),
        "enc_b_hh": s * jax.random.normal(ks[4], (1, 3 * hidden), jnp.float32),
        "dec_w_ih": s * jax.random.normal(ks[5], (n_fbin, 3 * hidden), jnp.float32),
        "dec_w_hh": s * jax.random.normal(ks[6], (hidden, 3 * hidden), jnp.float32),
        "dec_b_ih": s * jax.random.normal(ks[7], (1, 3 * hidden), jnp.float32),
        "dec_b_hh": s * jax.random.normal(ks[8], (1, 3 * hidden), jnp.float32),
        "dec_w_out": s * jax.random.normal(ks[9], (hidden, n_fbin), jnp.float32),
        "dec_b_out": jnp.zeros((1, n_fbin), jnp.float32),
    }


if __name__ == "__main__":
    B, T, VOCAB, EMBED, HIDDEN, N_FBIN, N_FRAME = 2, 8, 20, 16, 32, 16, 8

    key = jax.random.PRNGKey(0)
    k_par, k_tok, k_bos = jax.random.split(key, 3)

    params = init_params(k_par, VOCAB, EMBED, HIDDEN, N_FBIN)
    onomatopes = jax.random.randint(k_tok, (B, T), 0, VOCAB, dtype=jnp.int32)
    bos_embeddings = 0.1 * jax.random.normal(k_bos, (B, 1, N_FBIN), jnp.float32)

    # One-time parameter folding/packing (off the per-call path).
    prepared = prepare_params(params)

    out = seq2seq_forward(prepared, onomatopes, bos_embeddings, N_FRAME)
    out = jax.block_until_ready(out)
    assert out.shape == (B, N_FRAME, N_FBIN), out.shape

    ref = jax.block_until_ready(
        seq2seq_reference(params, onomatopes, bos_embeddings, N_FRAME))
    assert jnp.allclose(out, ref, atol=1e-4, rtol=1e-4), float(jnp.max(jnp.abs(out - ref)))

    # TODO(synk): get_loss (random teacher forcing + masked L1) is training-only glue and
    # is not part of forward(); it is not implemented as a kernel here.
    print("KERNEL_OK")
</pallas_src>

<mosaic_0001>
module attributes {stable_mosaic.version = 11 : i64} {
  func.func @_seq2seq_kernel(%arg0: memref<2x8xi32, #tpu.memory_space<vmem>>, %arg1: memref<2x16xf32, #tpu.memory_space<vmem>>, %arg2: memref<176x128xf32, #tpu.memory_space<vmem>>, %arg3: memref<2x128xf32, #tpu.memory_space<vmem>>) attributes {dimension_semantics = [], scalar_prefetch = 0 : i64, scratch_operands = 0 : i64, tpu.core_type = #tpu.core_type<tc>} {
    %c0 = arith.constant 0 : index
    %c0_0 = arith.constant 0 : index
    %0 = vector.load %arg2[%c0, %c0_0] : memref<176x128xf32, #tpu.memory_space<vmem>>, vector<24x128xf32>
    %c24 = arith.constant 24 : index
    %c0_1 = arith.constant 0 : index
    %1 = vector.load %arg2[%c24, %c0_1] : memref<176x128xf32, #tpu.memory_space<vmem>>, vector<32x128xf32>
    %c56 = arith.constant 56 : index
    %c0_2 = arith.constant 0 : index
    %2 = vector.load %arg2[%c56, %c0_2] : memref<176x128xf32, #tpu.memory_space<vmem>>, vector<16x128xf32>
    %c72 = arith.constant 72 : index
    %c0_3 = arith.constant 0 : index
    %3 = vector.load %arg2[%c72, %c0_3] : memref<176x128xf32, #tpu.memory_space<vmem>>, vector<32x128xf32>
    %c104 = arith.constant 104 : index
    %c0_4 = arith.constant 0 : index
    %4 = vector.load %arg2[%c104, %c0_4] : memref<176x128xf32, #tpu.memory_space<vmem>>, vector<32x128xf32>
    %c136 = arith.constant 136 : index
    %c0_5 = arith.constant 0 : index
    %5 = vector.load %arg2[%c136, %c0_5] : memref<176x128xf32, #tpu.memory_space<vmem>>, vector<32x128xf32>
    %6 = vector.extract_strided_slice %5 {offsets = [0, 0], sizes = [32, 16], strides = [1, 1]} : vector<32x128xf32> to vector<32x16xf32>
    %c168 = arith.constant 168 : index
    %c0_6 = arith.constant 0 : index
    %7 = vector.load %arg2[%c168, %c0_6] : memref<176x128xf32, #tpu.memory_space<vmem>>, vector<1x128xf32>
    %8 = vector.shape_cast %7 : vector<1x128xf32> to vector<1x128xf32>
    %9 = vector.broadcast %8 : vector<1x128xf32> to vector<2x128xf32>
    %c169 = arith.constant 169 : index
    %c0_7 = arith.constant 0 : index
    %10 = vector.load %arg2[%c169, %c0_7] : memref<176x128xf32, #tpu.memory_space<vmem>>, vector<1x128xf32>
    %11 = vector.shape_cast %10 : vector<1x128xf32> to vector<1x128xf32>
    %12 = vector.broadcast %11 : vector<1x128xf32> to vector<2x128xf32>
    %c170 = arith.constant 170 : index
    %c0_8 = arith.constant 0 : index
    %13 = vector.load %arg2[%c170, %c0_8] : memref<176x128xf32, #tpu.memory_space<vmem>>, vector<1x128xf32>
    %14 = vector.shape_cast %13 : vector<1x128xf32> to vector<1x128xf32>
    %15 = vector.broadcast %14 : vector<1x128xf32> to vector<2x128xf32>
    %c171 = arith.constant 171 : index
    %c0_9 = arith.constant 0 : index
    %16 = vector.load %arg2[%c171, %c0_9] : memref<176x128xf32, #tpu.memory_space<vmem>>, vector<1x128xf32>
    %17 = vector.shape_cast %16 : vector<1x128xf32> to vector<1x128xf32>
    %18 = vector.broadcast %17 : vector<1x128xf32> to vector<2x128xf32>
    %c172 = arith.constant 172 : index
    %c0_10 = arith.constant 0 : index
    %19 = vector.load %arg2[%c172, %c0_10] : memref<176x128xf32, #tpu.memory_space<vmem>>, vector<1x128xf32>
    %20 = vector.extract_strided_slice %19 {offsets = [0, 0], sizes = [1, 16], strides = [1, 1]} : vector<1x128xf32> to vector<1x16xf32>
    %21 = vector.shape_cast %20 : vector<1x16xf32> to vector<1x16xf32>
    %22 = vector.broadcast %21 : vector<1x16xf32> to vector<2x16xf32>
    %c0_11 = arith.constant 0 : index
    %c0_12 = arith.constant 0 : index
    %23 = vector.load %arg0[%c0_11, %c0_12] : memref<2x8xi32, #tpu.memory_space<vmem>>, vector<2x8xi32>
    %24 = tpu.iota {dimensions = array<i32: 1>} : vector<2x24xi32>
    %25 = vector.extract_strided_slice %23 {offsets = [0, 0], sizes = [2, 1], strides = [1, 1]} : vector<2x8xi32> to vector<2x1xi32>
    %26 = vector.broadcast %25 : vector<2x1xi32> to vector<2x24xi32>
    %27 = arith.cmpi eq, %26, %24 : vector<2x24xi32>
    %28 = arith.extui %27 : vector<2x24xi1> to vector<2x24xi32>
    %29 = arith.sitofp %28 : vector<2x24xi32> to vector<2x24xf32>
    %cst = arith.constant dense<0.000000e+00> : vector<2x128xf32>
    %30 = tpu.matmul %29, %0, %cst {dimension_numbers = #tpu.dot_dimension_numbers<[1], [0], [0], [1], [0, 0, 1, 1], [], []>} : vector<2x24xf32>, vector<24x128xf32>, vector<2x128xf32> -> vector<2x128xf32>
    %31 = vector.extract_strided_slice %23 {offsets = [0, 1], sizes = [2, 1], strides = [1, 1]} : vector<2x8xi32> to vector<2x1xi32>
    %32 = vector.broadcast %31 : vector<2x1xi32> to vector<2x24xi32>
    %33 = arith.cmpi eq, %32, %24 : vector<2x24xi32>
    %34 = arith.extui %33 : vector<2x24xi1> to vector<2x24xi32>
    %35 = arith.sitofp %34 : vector<2x24xi32> to vector<2x24xf32>
    %cst_13 = arith.constant dense<0.000000e+00> : vector<2x128xf32>
    %36 = tpu.matmul %35, %0, %cst_13 {dimension_numbers = #tpu.dot_dimension_numbers<[1], [0], [0], [1], [0, 0, 1, 1], [], []>} : vector<2x24xf32>, vector<24x128xf32>, vector<2x128xf32> -> vector<2x128xf32>
    %37 = vector.extract_strided_slice %23 {offsets = [0, 2], sizes = [2, 1], strides = [1, 1]} : vector<2x8xi32> to vector<2x1xi32>
    %38 = vector.broadcast %37 : vector<2x1xi32> to vector<2x24xi32>
    %39 = arith.cmpi eq, %38, %24 : vector<2x24xi32>
    %40 = arith.extui %39 : vector<2x24xi1> to vector<2x24xi32>
    %41 = arith.sitofp %40 : vector<2x24xi32> to vector<2x24xf32>
    %cst_14 = arith.constant dense<0.000000e+00> : vector<2x128xf32>
    %42 = tpu.matmul %41, %0, %cst_14 {dimension_numbers = #tpu.dot_dimension_numbers<[1], [0], [0], [1], [0, 0, 1, 1], [], []>} : vector<2x24xf32>, vector<24x128xf32>, vector<2x128xf32> -> vector<2x128xf32>
    %43 = vector.extract_strided_slice %23 {offsets = [0, 3], sizes = [2, 1], strides = [1, 1]} : vector<2x8xi32> to vector<2x1xi32>
    %44 = vector.broadcast %43 : vector<2x1xi32> to vector<2x24xi32>
    %45 = arith.cmpi eq, %44, %24 : vector<2x24xi32>
    %46 = arith.extui %45 : vector<2x24xi1> to vector<2x24xi32>
    %47 = arith.sitofp %46 : vector<2x24xi32> to vector<2x24xf32>
    %cst_15 = arith.constant dense<0.000000e+00> : vector<2x128xf32>
    %48 = tpu.matmul %47, %0, %cst_15 {dimension_numbers = #tpu.dot_dimension_numbers<[1], [0], [0], [1], [0, 0, 1, 1], [], []>} : vector<2x24xf32>, vector<24x128xf32>, vector<2x128xf32> -> vector<2x128xf32>
    %49 = vector.extract_strided_slice %23 {offsets = [0, 4], sizes = [2, 1], strides = [1, 1]} : vector<2x8xi32> to vector<2x1xi32>
    %50 = vector.broadcast %49 : vector<2x1xi32> to vector<2x24xi32>
    %51 = arith.cmpi eq, %50, %24 : vector<2x24xi32>
    %52 = arith.extui %51 : vector<2x24xi1> to vector<2x24xi32>
    %53 = arith.sitofp %52 : vector<2x24xi32> to vector<2x24xf32>
    %cst_16 = arith.constant dense<0.000000e+00> : vector<2x128xf32>
    %54 = tpu.matmul %53, %0, %cst_16 {dimension_numbers = #tpu.dot_dimension_numbers<[1], [0], [0], [1], [0, 0, 1, 1], [], []>} : vector<2x24xf32>, vector<24x128xf32>, vector<2x128xf32> -> vector<2x128xf32>
    %55 = vector.extract_strided_slice %23 {offsets = [0, 5], sizes = [2, 1], strides = [1, 1]} : vector<2x8xi32> to vector<2x1xi32>
    %56 = vector.broadcast %55 : vector<2x1xi32> to vector<2x24xi32>
    %57 = arith.cmpi eq, %56, %24 : vector<2x24xi32>
    %58 = arith.extui %57 : vector<2x24xi1> to vector<2x24xi32>
    %59 = arith.sitofp %58 : vector<2x24xi32> to vector<2x24xf32>
    %cst_17 = arith.constant dense<0.000000e+00> : vector<2x128xf32>
    %60 = tpu.matmul %59, %0, %cst_17 {dimension_numbers = #tpu.dot_dimension_numbers<[1], [0], [0], [1], [0, 0, 1, 1], [], []>} : vector<2x24xf32>, vector<24x128xf32>, vector<2x128xf32> -> vector<2x128xf32>
    %61 = vector.extract_strided_slice %23 {offsets = [0, 6], sizes = [2, 1], strides = [1, 1]} : vector<2x8xi32> to vector<2x1xi32>
    %62 = vector.broadcast %61 : vector<2x1xi32> to vector<2x24xi32>
    %63 = arith.cmpi eq, %62, %24 : vector<2x24xi32>
    %64 = arith.extui %63 : vector<2x24xi1> to vector<2x24xi32>
    %65 = arith.sitofp %64 : vector<2x24xi32> to vector<2x24xf32>
    %cst_18 = arith.constant dense<0.000000e+00> : vector<2x128xf32>
    %66 = tpu.matmul %65, %0, %cst_18 {dimension_numbers = #tpu.dot_dimension_numbers<[1], [0], [0], [1], [0, 0, 1, 1], [], []>} : vector<2x24xf32>, vector<24x128xf32>, vector<2x128xf32> -> vector<2x128xf32>
    %67 = vector.extract_strided_slice %23 {offsets = [0, 7], sizes = [2, 1], strides = [1, 1]} : vector<2x8xi32> to vector<2x1xi32>
    %68 = vector.broadcast %67 : vector<2x1xi32> to vector<2x24xi32>
    %69 = arith.cmpi eq, %68, %24 : vector<2x24xi32>
    %70 = arith.extui %69 : vector<2x24xi1> to vector<2x24xi32>
    %71 = arith.sitofp %70 : vector<2x24xi32> to vector<2x24xf32>
    %cst_19 = arith.constant dense<0.000000e+00> : vector<2x128xf32>
    %72 = tpu.matmul %71, %0, %cst_19 {dimension_numbers = #tpu.dot_dimension_numbers<[1], [0], [0], [1], [0, 0, 1, 1], [], []>} : vector<2x24xf32>, vector<24x128xf32>, vector<2x128xf32> -> vector<2x128xf32>
    %cst_20 = arith.constant 0.000000e+00 : f32
    %73 = vector.broadcast %cst_20 : f32 to vector<2x32xf32>
    %74 = vector.extract_strided_slice %30 {offsets = [0, 0], sizes = [2, 32], strides = [1, 1]} : vector<2x128xf32> to vector<2x32xf32>
    %75 = vector.extract_strided_slice %9 {offsets = [0, 0], sizes = [2, 32], strides = [1, 1]} : vector<2x128xf32> to vector<2x32xf32>
    %76 = arith.addf %74, %75 : vector<2x32xf32>
    %77 = arith.negf %76 : vector<2x32xf32>
    %78 = math.exp %77 : vector<2x32xf32>
    %cst_21 = arith.constant 1.000000e+00 : f32
    %79 = vector.broadcast %cst_21 : f32 to vector<2x32xf32>
    %80 = arith.addf %79, %78 : vector<2x32xf32>
    %81 = arith.divf %79, %80 : vector<2x32xf32>
    %82 = vector.extract_strided_slice %30 {offsets = [0, 32], sizes = [2, 32], strides = [1, 1]} : vector<2x128xf32> to vector<2x32xf32>
    %83 = vector.extract_strided_slice %9 {offsets = [0, 32], sizes = [2, 32], strides = [1, 1]} : vector<2x128xf32> to vector<2x32xf32>
    %84 = arith.addf %82, %83 : vector<2x32xf32>
    %85 = arith.negf %84 : vector<2x32xf32>
    %86 = math.exp %85 : vector<2x32xf32>
    %cst_22 = arith.constant 1.000000e+00 : f32
    %87 = vector.broadcast %cst_22 : f32 to vector<2x32xf32>
    %88 = arith.addf %87, %86 : vector<2x32xf32>
    %89 = arith.divf %87, %88 : vector<2x32xf32>
    %90 = vector.extract_strided_slice %30 {offsets = [0, 64], sizes = [2, 32], strides = [1, 1]} : vector<2x128xf32> to vector<2x32xf32>
    %91 = vector.extract_strided_slice %9 {offsets = [0, 64], sizes = [2, 32], strides = [1, 1]} : vector<2x128xf32> to vector<2x32xf32>
    %92 = arith.mulf %81, %91 : vector<2x32xf32>
    %93 = arith.addf %90, %92 : vector<2x32xf32>
    %94 = math.tanh %93 : vector<2x32xf32>
    %cst_23 = arith.constant 1.000000e+00 : f32
    %95 = vector.broadcast %cst_23 : f32 to vector<2x32xf32>
    %96 = arith.subf %95, %89 : vector<2x32xf32>
    %97 = arith.mulf %96, %94 : vector<2x32xf32>
    %98 = arith.mulf %89, %73 : vector<2x32xf32>
    %99 = arith.addf %97, %98 : vector<2x32xf32>
    %cst_24 = arith.constant dense<0.000000e+00> : vector<2x128xf32>
    %100 = tpu.matmul %99, %1, %cst_24 {dimension_numbers = #tpu.dot_dimension_numbers<[1], [0], [0], [1], [0, 0, 1, 1], [], []>} : vector<2x32xf32>, vector<32x128xf32>, vector<2x128xf32> -> vector<2x128xf32>
    %101 = arith.addf %100, %9 : vector<2x128xf32>
    %102 = vector.extract_strided_slice %36 {offsets = [0, 0], sizes = [2, 32], strides = [1, 1]} : vector<2x128xf32> to vector<2x32xf32>
    %103 = vector.extract_strided_slice %101 {offsets = [0, 0], sizes = [2, 32], strides = [1, 1]} : vector<2x128xf32> to vector<2x32xf32>
    %104 = arith.addf %102, %103 : vector<2x32xf32>
    %105 = arith.negf %104 : vector<2x32xf32>
    %106 = math.exp %105 : vector<2x32xf32>
    %cst_25 = arith.constant 1.000000e+00 : f32
    %107 = vector.broadcast %cst_25 : f32 to vector<2x32xf32>
    %108 = arith.addf %107, %106 : vector<2x32xf32>
    %109 = arith.divf %107, %108 : vector<2x32xf32>
    %110 = vector.extract_strided_slice %36 {offsets = [0, 32], sizes = [2, 32], strides = [1, 1]} : vector<2x128xf32> to vector<2x32xf32>
    %111 = vector.extract_strided_slice %101 {offsets = [0, 32], sizes = [2, 32], strides = [1, 1]} : vector<2x128xf32> to vector<2x32xf32>
    %112 = arith.addf %110, %111 : vector<2x32xf32>
    %113 = arith.negf %112 : vector<2x32xf32>
    %114 = math.exp %113 : vector<2x32xf32>
    %cst_26 = arith.constant 1.000000e+00 : f32
    %115 = vector.broadcast %cst_26 : f32 to vector<2x32xf32>
    %116 = arith.addf %115, %114 : vector<2x32xf32>
    %117 = arith.divf %115, %116 : vector<2x32xf32>
    %118 = vector.extract_strided_slice %36 {offsets = [0, 64], sizes = [2, 32], strides = [1, 1]} : vector<2x128xf32> to vector<2x32xf32>
    %119 = vector.extract_strided_slice %101 {offsets = [0, 64], sizes = [2, 32], strides = [1, 1]} : vector<2x128xf32> to vector<2x32xf32>
    %120 = arith.mulf %109, %119 : vector<2x32xf32>
    %121 = arith.addf %118, %120 : vector<2x32xf32>
    %122 = math.tanh %121 : vector<2x32xf32>
    %cst_27 = arith.constant 1.000000e+00 : f32
    %123 = vector.broadcast %cst_27 : f32 to vector<2x32xf32>
    %124 = arith.subf %123, %117 : vector<2x32xf32>
    %125 = arith.mulf %124, %122 : vector<2x32xf32>
    %126 = arith.mulf %117, %99 : vector<2x32xf32>
    %127 = arith.addf %125, %126 : vector<2x32xf32>
    %cst_28 = arith.constant dense<0.000000e+00> : vector<2x128xf32>
    %128 = tpu.matmul %127, %1, %cst_28 {dimension_numbers = #tpu.dot_dimension_numbers<[1], [0], [0], [1], [0, 0, 1, 1], [], []>} : vector<2x32xf32>, vector<32x128xf32>, vector<2x128xf32> -> vector<2x128xf32>
    %129 = arith.addf %128, %9 : vector<2x128xf32>
    %130 = vector.extract_strided_slice %42 {offsets = [0, 0], sizes = [2, 32], strides = [1, 1]} : vector<2x128xf32> to vector<2x32xf32>
    %131 = vector.extract_strided_slice %129 {offsets = [0, 0], sizes = [2, 32], strides = [1, 1]} : vector<2x128xf32> to vector<2x32xf32>
    %132 = arith.addf %130, %131 : vector<2x32xf32>
    %133 = arith.negf %132 : vector<2x32xf32>
    %134 = math.exp %133 : vector<2x32xf32>
    %cst_29 = arith.constant 1.000000e+00 : f32
    %135 = vector.broadcast %cst_29 : f32 to vector<2x32xf32>
    %136 = arith.addf %135, %134 : vector<2x32xf32>
    %137 = arith.divf %135, %136 : vector<2x32xf32>
    %138 = vector.extract_strided_slice %42 {offsets = [0, 32], sizes = [2, 32], strides = [1, 1]} : vector<2x128xf32> to vector<2x32xf32>
    %139 = vector.extract_strided_slice %129 {offsets = [0, 32], sizes = [2, 32], strides = [1, 1]} : vector<2x128xf32> to vector<2x32xf32>
    %140 = arith.addf %138, %139 : vector<2x32xf32>
    %141 = arith.negf %140 : vector<2x32xf32>
    %142 = math.exp %141 : vector<2x32xf32>
    %cst_30 = arith.constant 1.000000e+00 : f32
    %143 = vector.broadcast %cst_30 : f32 to vector<2x32xf32>
    %144 = arith.addf %143, %142 : vector<2x32xf32>
    %145 = arith.divf %143, %144 : vector<2x32xf32>
    %146 = vector.extract_strided_slice %42 {offsets = [0, 64], sizes = [2, 32], strides = [1, 1]} : vector<2x128xf32> to vector<2x32xf32>
    %147 = vector.extract_strided_slice %129 {offsets = [0, 64], sizes = [2, 32], strides = [1, 1]} : vector<2x128xf32> to vector<2x32xf32>
    %148 = arith.mulf %137, %147 : vector<2x32xf32>
    %149 = arith.addf %146, %148 : vector<2x32xf32>
    %150 = math.tanh %149 : vector<2x32xf32>
    %cst_31 = arith.constant 1.000000e+00 : f32
    %151 = vector.broadcast %cst_31 : f32 to vector<2x32xf32>
    %152 = arith.subf %151, %145 : vector<2x32xf32>
    %153 = arith.mulf %152, %150 : vector<2x32xf32>
    %154 = arith.mulf %145, %127 : vector<2x32xf32>
    %155 = arith.addf %153, %154 : vector<2x32xf32>
    %cst_32 = arith.constant dense<0.000000e+00> : vector<2x128xf32>
    %156 = tpu.matmul %155, %1, %cst_32 {dimension_numbers = #tpu.dot_dimension_numbers<[1], [0], [0], [1], [0, 0, 1, 1], [], []>} : vector<2x32xf32>, vector<32x128xf32>, vector<2x128xf32> -> vector<2x128xf32>
    %157 = arith.addf %156, %9 : vector<2x128xf32>
    %158 = vector.extract_strided_slice %48 {offsets = [0, 0], sizes = [2, 32], strides = [1, 1]} : vector<2x128xf32> to vector<2x32xf32>
    %159 = vector.extract_strided_slice %157 {offsets = [0, 0], sizes = [2, 32], strides = [1, 1]} : vector<2x128xf32> to vector<2x32xf32>
    %160 = arith.addf %158, %159 : vector<2x32xf32>
    %161 = arith.negf %160 : vector<2x32xf32>
    %162 = math.exp %161 : vector<2x32xf32>
    %cst_33 = arith.constant 1.000000e+00 : f32
    %163 = vector.broadcast %cst_33 : f32 to vector<2x32xf32>
    %164 = arith.addf %163, %162 : vector<2x32xf32>
    %165 = arith.divf %163, %164 : vector<2x32xf32>
    %166 = vector.extract_strided_slice %48 {offsets = [0, 32], sizes = [2, 32], strides = [1, 1]} : vector<2x128xf32> to vector<2x32xf32>
    %167 = vector.extract_strided_slice %157 {offsets = [0, 32], sizes = [2, 32], strides = [1, 1]} : vector<2x128xf32> to vector<2x32xf32>
    %168 = arith.addf %166, %167 : vector<2x32xf32>
    %169 = arith.negf %168 : vector<2x32xf32>
    %170 = math.exp %169 : vector<2x32xf32>
    %cst_34 = arith.constant 1.000000e+00 : f32
    %171 = vector.broadcast %cst_34 : f32 to vector<2x32xf32>
    %172 = arith.addf %171, %170 : vector<2x32xf32>
    %173 = arith.divf %171, %172 : vector<2x32xf32>
    %174 = vector.extract_strided_slice %48 {offsets = [0, 64], sizes = [2, 32], strides = [1, 1]} : vector<2x128xf32> to vector<2x32xf32>
    %175 = vector.extract_strided_slice %157 {offsets = [0, 64], sizes = [2, 32], strides = [1, 1]} : vector<2x128xf32> to vector<2x32xf32>
    %176 = arith.mulf %165, %175 : vector<2x32xf32>
    %177 = arith.addf %174, %176 : vector<2x32xf32>
    %178 = math.tanh %177 : vector<2x32xf32>
    %cst_35 = arith.constant 1.000000e+00 : f32
    %179 = vector.broadcast %cst_35 : f32 to vector<2x32xf32>
    %180 = arith.subf %179, %173 : vector<2x32xf32>
    %181 = arith.mulf %180, %178 : vector<2x32xf32>
    %182 = arith.mulf %173, %155 : vector<2x32xf32>
    %183 = arith.addf %181, %182 : vector<2x32xf32>
    %cst_36 = arith.constant dense<0.000000e+00> : vector<2x128xf32>
    %184 = tpu.matmul %183, %1, %cst_36 {dimension_numbers = #tpu.dot_dimension_numbers<[1], [0], [0], [1], [0, 0, 1, 1], [], []>} : vector<2x32xf32>, vector<32x128xf32>, vector<2x128xf32> -> vector<2x128xf32>
    %185 = arith.addf %184, %9 : vector<2x128xf32>
    %186 = vector.extract_strided_slice %54 {offsets = [0, 0], sizes = [2, 32], strides = [1, 1]} : vector<2x128xf32> to vector<2x32xf32>
    %187 = vector.extract_strided_slice %185 {offsets = [0, 0], sizes = [2, 32], strides = [1, 1]} : vector<2x128xf32> to vector<2x32xf32>
    %188 = arith.addf %186, %187 : vector<2x32xf32>
    %189 = arith.negf %188 : vector<2x32xf32>
    %190 = math.exp %189 : vector<2x32xf32>
    %cst_37 = arith.constant 1.000000e+00 : f32
    %191 = vector.broadcast %cst_37 : f32 to vector<2x32xf32>
    %192 = arith.addf %191, %190 : vector<2x32xf32>
    %193 = arith.divf %191, %192 : vector<2x32xf32>
    %194 = vector.extract_strided_slice %54 {offsets = [0, 32], sizes = [2, 32], strides = [1, 1]} : vector<2x128xf32> to vector<2x32xf32>
    %195 = vector.extract_strided_slice %185 {offsets = [0, 32], sizes = [2, 32], strides = [1, 1]} : vector<2x128xf32> to vector<2x32xf32>
    %196 = arith.addf %194, %195 : vector<2x32xf32>
    %197 = arith.negf %196 : vector<2x32xf32>
    %198 = math.exp %197 : vector<2x32xf32>
    %cst_38 = arith.constant 1.000000e+00 : f32
    %199 = vector.broadcast %cst_38 : f32 to vector<2x32xf32>
    %200 = arith.addf %199, %198 : vector<2x32xf32>
    %201 = arith.divf %199, %200 : vector<2x32xf32>
    %202 = vector.extract_strided_slice %54 {offsets = [0, 64], sizes = [2, 32], strides = [1, 1]} : vector<2x128xf32> to vector<2x32xf32>
    %203 = vector.extract_strided_slice %185 {offsets = [0, 64], sizes = [2, 32], strides = [1, 1]} : vector<2x128xf32> to vector<2x32xf32>
    %204 = arith.mulf %193, %203 : vector<2x32xf32>
    %205 = arith.addf %202, %204 : vector<2x32xf32>
    %206 = math.tanh %205 : vector<2x32xf32>
    %cst_39 = arith.constant 1.000000e+00 : f32
    %207 = vector.broadcast %cst_39 : f32 to vector<2x32xf32>
    %208 = arith.subf %207, %201 : vector<2x32xf32>
    %209 = arith.mulf %208, %206 : vector<2x32xf32>
    %210 = arith.mulf %201, %183 : vector<2x32xf32>
    %211 = arith.addf %209, %210 : vector<2x32xf32>
    %cst_40 = arith.constant dense<0.000000e+00> : vector<2x128xf32>
    %212 = tpu.matmul %211, %1, %cst_40 {dimension_numbers = #tpu.dot_dimension_numbers<[1], [0], [0], [1], [0, 0, 1, 1], [], []>} : vector<2x32xf32>, vector<32x128xf32>, vector<2x128xf32> -> vector<2x128xf32>
    %213 = arith.addf %212, %9 : vector<2x128xf32>
    %214 = vector.extract_strided_slice %60 {offsets = [0, 0], sizes = [2, 32], strides = [1, 1]} : vector<2x128xf32> to vector<2x32xf32>
    %215 = vector.extract_strided_slice %213 {offsets = [0, 0], sizes = [2, 32], strides = [1, 1]} : vector<2x128xf32> to vector<2x32xf32>
    %216 = arith.addf %214, %215 : vector<2x32xf32>
    %217 = arith.negf %216 : vector<2x32xf32>
    %218 = math.exp %217 : vector<2x32xf32>
    %cst_41 = arith.constant 1.000000e+00 : f32
    %219 = vector.broadcast %cst_41 : f32 to vector<2x32xf32>
    %220 = arith.addf %219, %218 : vector<2x32xf32>
    %221 = arith.divf %219, %220 : vector<2x32xf32>
    %222 = vector.extract_strided_slice %60 {offsets = [0, 32], sizes = [2, 32], strides = [1, 1]} : vector<2x128xf32> to vector<2x32xf32>
    %223 = vector.extract_strided_slice %213 {offsets = [0, 32], sizes = [2, 32], strides = [1, 1]} : vector<2x128xf32> to vector<2x32xf32>
    %224 = arith.addf %222, %223 : vector<2x32xf32>
    %225 = arith.negf %224 : vector<2x32xf32>
    %226 = math.exp %225 : vector<2x32xf32>
    %cst_42 = arith.constant 1.000000e+00 : f32
    %227 = vector.broadcast %cst_42 : f32 to vector<2x32xf32>
    %228 = arith.addf %227, %226 : vector<2x32xf32>
    %229 = arith.divf %227, %228 : vector<2x32xf32>
    %230 = vector.extract_strided_slice %60 {offsets = [0, 64], sizes = [2, 32], strides = [1, 1]} : vector<2x128xf32> to vector<2x32xf32>
    %231 = vector.extract_strided_slice %213 {offsets = [0, 64], sizes = [2, 32], strides = [1, 1]} : vector<2x128xf32> to vector<2x32xf32>
    %232 = arith.mulf %221, %231 : vector<2x32xf32>
    %233 = arith.addf %230, %232 : vector<2x32xf32>
    %234 = math.tanh %233 : vector<2x32xf32>
    %cst_43 = arith.constant 1.000000e+00 : f32
    %235 = vector.broadcast %cst_43 : f32 to vector<2x32xf32>
    %236 = arith.subf %235, %229 : vector<2x32xf32>
    %237 = arith.mulf %236, %234 : vector<2x32xf32>
    %238 = arith.mulf %229, %211 : vector<2x32xf32>
    %239 = arith.addf %237, %238 : vector<2x32xf32>
    %cst_44 = arith.constant dense<0.000000e+00> : vector<2x128xf32>
    %240 = tpu.matmul %239, %1, %cst_44 {dimension_numbers = #tpu.dot_dimension_numbers<[1], [0], [0], [1], [0, 0, 1, 1], [], []>} : vector<2x32xf32>, vector<32x128xf32>, vector<2x128xf32> -> vector<2x128xf32>
    %241 = arith.addf %240, %9 : vector<2x128xf32>
    %242 = vector.extract_strided_slice %66 {offsets = [0, 0], sizes = [2, 32], strides = [1, 1]} : vector<2x128xf32> to vector<2x32xf32>
    %243 = vector.extract_strided_slice %241 {offsets = [0, 0], sizes = [2, 32], strides = [1, 1]} : vector<2x128xf32> to vector<2x32xf32>
    %244 = arith.addf %242, %243 : vector<2x32xf32>
    %245 = arith.negf %244 : vector<2x32xf32>
    %246 = math.exp %245 : vector<2x32xf32>
    %cst_45 = arith.constant 1.000000e+00 : f32
    %247 = vector.broadcast %cst_45 : f32 to vector<2x32xf32>
    %248 = arith.addf %247, %246 : vector<2x32xf32>
    %249 = arith.divf %247, %248 : vector<2x32xf32>
    %250 = vector.extract_strided_slice %66 {offsets = [0, 32], sizes = [2, 32], strides = [1, 1]} : vector<2x128xf32> to vector<2x32xf32>
    %251 = vector.extract_strided_slice %241 {offsets = [0, 32], sizes = [2, 32], strides = [1, 1]} : vector<2x128xf32> to vector<2x32xf32>
    %252 = arith.addf %250, %251 : vector<2x32xf32>
    %253 = arith.negf %252 : vector<2x32xf32>
    %254 = math.exp %253 : vector<2x32xf32>
    %cst_46 = arith.constant 1.000000e+00 : f32
    %255 = vector.broadcast %cst_46 : f32 to vector<2x32xf32>
    %256 = arith.addf %255, %254 : vector<2x32xf32>
    %257 = arith.divf %255, %256 : vector<2x32xf32>
    %258 = vector.extract_strided_slice %66 {offsets = [0, 64], sizes = [2, 32], strides = [1, 1]} : vector<2x128xf32> to vector<2x32xf32>
    %259 = vector.extract_strided_slice %241 {offsets = [0, 64], sizes = [2, 32], strides = [1, 1]} : vector<2x128xf32> to vector<2x32xf32>
    %260 = arith.mulf %249, %259 : vector<2x32xf32>
    %261 = arith.addf %258, %260 : vector<2x32xf32>
    %262 = math.tanh %261 : vector<2x32xf32>
    %cst_47 = arith.constant 1.000000e+00 : f32
    %263 = vector.broadcast %cst_47 : f32 to vector<2x32xf32>
    %264 = arith.subf %263, %257 : vector<2x32xf32>
    %265 = arith.mulf %264, %262 : vector<2x32xf32>
    %266 = arith.mulf %257, %239 : vector<2x32xf32>
    %267 = arith.addf %265, %266 : vector<2x32xf32>
    %cst_48 = arith.constant dense<0.000000e+00> : vector<2x128xf32>
    %268 = tpu.matmul %267, %1, %cst_48 {dimension_numbers = #tpu.dot_dimension_numbers<[1], [0], [0], [1], [0, 0, 1, 1], [], []>} : vector<2x32xf32>, vector<32x128xf32>, vector<2x128xf32> -> vector<2x128xf32>
    %269 = arith.addf %268, %9 : vector<2x128xf32>
    %270 = vector.extract_strided_slice %72 {offsets = [0, 0], sizes = [2, 32], strides = [1, 1]} : vector<2x128xf32> to vector<2x32xf32>
    %271 = vector.extract_strided_slice %269 {offsets = [0, 0], sizes = [2, 32], strides = [1, 1]} : vector<2x128xf32> to vector<2x32xf32>
    %272 = arith.addf %270, %271 : vector<2x32xf32>
    %273 = arith.negf %272 : vector<2x32xf32>
    %274 = math.exp %273 : vector<2x32xf32>
    %cst_49 = arith.constant 1.000000e+00 : f32
    %275 = vector.broadcast %cst_49 : f32 to vector<2x32xf32>
    %276 = arith.addf %275, %274 : vector<2x32xf32>
    %277 = arith.divf %275, %276 : vector<2x32xf32>
    %278 = vector.extract_strided_slice %72 {offsets = [0, 32], sizes = [2, 32], strides = [1, 1]} : vector<2x128xf32> to vector<2x32xf32>
    %279 = vector.extract_strided_slice %269 {offsets = [0, 32], sizes = [2, 32], strides = [1, 1]} : vector<2x128xf32> to vector<2x32xf32>
    %280 = arith.addf %278, %279 : vector<2x32xf32>
    %281 = arith.negf %280 : vector<2x32xf32>
    %282 = math.exp %281 : vector<2x32xf32>
    %cst_50 = arith.constant 1.000000e+00 : f32
    %283 = vector.broadcast %cst_50 : f32 to vector<2x32xf32>
    %284 = arith.addf %283, %282 : vector<2x32xf32>
    %285 = arith.divf %283, %284 : vector<2x32xf32>
    %286 = vector.extract_strided_slice %72 {offsets = [0, 64], sizes = [2, 32], strides = [1, 1]} : vector<2x128xf32> to vector<2x32xf32>
    %287 = vector.extract_strided_slice %269 {offsets = [0, 64], sizes = [2, 32], strides = [1, 1]} : vector<2x128xf32> to vector<2x32xf32>
    %288 = arith.mulf %277, %287 : vector<2x32xf32>
    %289 = arith.addf %286, %288 : vector<2x32xf32>
    %290 = math.tanh %289 : vector<2x32xf32>
    %cst_51 = arith.constant 1.000000e+00 : f32
    %291 = vector.broadcast %cst_51 : f32 to vector<2x32xf32>
    %292 = arith.subf %291, %285 : vector<2x32xf32>
    %293 = arith.mulf %292, %290 : vector<2x32xf32>
    %294 = arith.mulf %285, %267 : vector<2x32xf32>
    %295 = arith.addf %293, %294 : vector<2x32xf32>
    %c0_52 = arith.constant 0 : index
    %c0_53 = arith.constant 0 : index
    %296 = vector.load %arg1[%c0_52, %c0_53] : memref<2x16xf32, #tpu.memory_space<vmem>>, vector<2x16xf32>
    %cst_54 = arith.constant dense<0.000000e+00> : vector<2x128xf32>
    %297 = tpu.matmul %296, %2, %cst_54 {dimension_numbers = #tpu.dot_dimension_numbers<[1], [0], [0], [1], [0, 0, 1, 1], [], []>} : vector<2x16xf32>, vector<16x128xf32>, vector<2x128xf32> -> vector<2x128xf32>
    %298 = arith.addf %297, %12 : vector<2x128xf32>
    %cst_55 = arith.constant dense<0.000000e+00> : vector<2x128xf32>
    %299 = tpu.matmul %295, %3, %cst_55 {dimension_numbers = #tpu.dot_dimension_numbers<[1], [0], [0], [1], [0, 0, 1, 1], [], []>} : vector<2x32xf32>, vector<32x128xf32>, vector<2x128xf32> -> vector<2x128xf32>
    %300 = arith.addf %299, %15 : vector<2x128xf32>
    %301 = vector.extract_strided_slice %298 {offsets = [0, 0], sizes = [2, 32], strides = [1, 1]} : vector<2x128xf32> to vector<2x32xf32>
    %302 = vector.extract_strided_slice %300 {offsets = [0, 0], sizes = [2, 32], strides = [1, 1]} : vector<2x128xf32> to vector<2x32xf32>
    %303 = arith.addf %301, %302 : vector<2x32xf32>
    %304 = arith.negf %303 : vector<2x32xf32>
    %305 = math.exp %304 : vector<2x32xf32>
    %cst_56 = arith.constant 1.000000e+00 : f32
    %306 = vector.broadcast %cst_56 : f32 to vector<2x32xf32>
    %307 = arith.addf %306, %305 : vector<2x32xf32>
    %308 = arith.divf %306, %307 : vector<2x32xf32>
    %309 = vector.extract_strided_slice %298 {offsets = [0, 32], sizes = [2, 32], strides = [1, 1]} : vector<2x128xf32> to vector<2x32xf32>
    %310 = vector.extract_strided_slice %300 {offsets = [0, 32], sizes = [2, 32], strides = [1, 1]} : vector<2x128xf32> to vector<2x32xf32>
    %311 = arith.addf %309, %310 : vector<2x32xf32>
    %312 = arith.negf %311 : vector<2x32xf32>
    %313 = math.exp %312 : vector<2x32xf32>
    %cst_57 = arith.constant 1.000000e+00 : f32
    %314 = vector.broadcast %cst_57 : f32 to vector<2x32xf32>
    %315 = arith.addf %314, %313 : vector<2x32xf32>
    %316 = arith.divf %314, %315 : vector<2x32xf32>
    %317 = vector.extract_strided_slice %298 {offsets = [0, 64], sizes = [2, 32], strides = [1, 1]} : vector<2x128xf32> to vector<2x32xf32>
    %318 = vector.extract_strided_slice %300 {offsets = [0, 64], sizes = [2, 32], strides = [1, 1]} : vector<2x128xf32> to vector<2x32xf32>
    %319 = arith.mulf %308, %318 : vector<2x32xf32>
    %320 = arith.addf %317, %319 : vector<2x32xf32>
    %321 = math.tanh %320 : vector<2x32xf32>
    %cst_58 = arith.constant 1.000000e+00 : f32
    %322 = vector.broadcast %cst_58 : f32 to vector<2x32xf32>
    %323 = arith.subf %322, %316 : vector<2x32xf32>
    %324 = arith.mulf %323, %321 : vector<2x32xf32>
    %325 = arith.mulf %316, %295 : vector<2x32xf32>
    %326 = arith.addf %324, %325 : vector<2x32xf32>
    %cst_59 = arith.constant dense<0.000000e+00> : vector<2x16xf32>
    %327 = tpu.matmul %326, %6, %cst_59 {dimension_numbers = #tpu.dot_dimension_numbers<[1], [0], [0], [1], [0, 0, 1, 1], [], []>} : vector<2x32xf32>, vector<32x16xf32>, vector<2x16xf32> -> vector<2x16xf32>
    %328 = arith.addf %327, %22 : vector<2x16xf32>
    %cst_60 = arith.constant dense<0.000000e+00> : vector<2x128xf32>
    %329 = tpu.matmul %326, %4, %cst_60 {dimension_numbers = #tpu.dot_dimension_numbers<[1], [0], [0], [1], [0, 0, 1, 1], [], []>} : vector<2x32xf32>, vector<32x128xf32>, vector<2x128xf32> -> vector<2x128xf32>
    %330 = arith.addf %329, %18 : vector<2x128xf32>
    %331 = vector.extract_strided_slice %330 {offsets = [0, 0], sizes = [2, 32], strides = [1, 1]} : vector<2x128xf32> to vector<2x32xf32>
    %332 = arith.negf %331 : vector<2x32xf32>
    %333 = math.exp %332 : vector<2x32xf32>
    %cst_61 = arith.constant 1.000000e+00 : f32
    %334 = vector.broadcast %cst_61 : f32 to vector<2x32xf32>
    %335 = arith.addf %334, %333 : vector<2x32xf32>
    %336 = arith.divf %334, %335 : vector<2x32xf32>
    %337 = vector.extract_strided_slice %330 {offsets = [0, 32], sizes = [2, 32], strides = [1, 1]} : vector<2x128xf32> to vector<2x32xf32>
    %338 = arith.negf %337 : vector<2x32xf32>
    %339 = math.exp %338 : vector<2x32xf32>
    %cst_62 = arith.constant 1.000000e+00 : f32
    %340 = vector.broadcast %cst_62 : f32 to vector<2x32xf32>
    %341 = arith.addf %340, %339 : vector<2x32xf32>
    %342 = arith.divf %340, %341 : vector<2x32xf32>
    %343 = vector.extract_strided_slice %330 {offsets = [0, 64], sizes = [2, 32], strides = [1, 1]} : vector<2x128xf32> to vector<2x32xf32>
    %344 = vector.extract_strided_slice %330 {offsets = [0, 96], sizes = [2, 32], strides = [1, 1]} : vector<2x128xf32> to vector<2x32xf32>
    %345 = arith.mulf %336, %344 : vector<2x32xf32>
    %346 = arith.addf %343, %345 : vector<2x32xf32>
    %347 = math.tanh %346 : vector<2x32xf32>
    %cst_63 = arith.constant 1.000000e+00 : f32
    %348 = vector.broadcast %cst_63 : f32 to vector<2x32xf32>
    %349 = arith.subf %348, %342 : vector<2x32xf32>
    %350 = arith.mulf %349, %347 : vector<2x32xf32>
    %351 = arith.mulf %342, %326 : vector<2x32xf32>
    %352 = arith.addf %350, %351 : vector<2x32xf32>
    %cst_64 = arith.constant dense<0.000000e+00> : vector<2x16xf32>
    %353 = tpu.matmul %352, %6, %cst_64 {dimension_numbers = #tpu.dot_dimension_numbers<[1], [0], [0], [1], [0, 0, 1, 1], [], []>} : vector<2x32xf32>, vector<32x16xf32>, vector<2x16xf32> -> vector<2x16xf32>
    %354 = arith.addf %353, %22 : vector<2x16xf32>
    %cst_65 = arith.constant dense<0.000000e+00> : vector<2x128xf32>
    %355 = tpu.matmul %352, %4, %cst_65 {dimension_numbers = #tpu.dot_dimension_numbers<[1], [0], [0], [1], [0, 0, 1, 1], [], []>} : vector<2x32xf32>, vector<32x128xf32>, vector<2x128xf32> -> vector<2x128xf32>
    %356 = arith.addf %355, %18 : vector<2x128xf32>
    %357 = vector.extract_strided_slice %356 {offsets = [0, 0], sizes = [2, 32], strides = [1, 1]} : vector<2x128xf32> to vector<2x32xf32>
    %358 = arith.negf %357 : vector<2x32xf32>
    %359 = math.exp %358 : vector<2x32xf32>
    %cst_66 = arith.constant 1.000000e+00 : f32
    %360 = vector.broadcast %cst_66 : f32 to vector<2x32xf32>
    %361 = arith.addf %360, %359 : vector<2x32xf32>
    %362 = arith.divf %360, %361 : vector<2x32xf32>
    %363 = vector.extract_strided_slice %356 {offsets = [0, 32], sizes = [2, 32], strides = [1, 1]} : vector<2x128xf32> to vector<2x32xf32>
    %364 = arith.negf %363 : vector<2x32xf32>
    %365 = math.exp %364 : vector<2x32xf32>
    %cst_67 = arith.constant 1.000000e+00 : f32
    %366 = vector.broadcast %cst_67 : f32 to vector<2x32xf32>
    %367 = arith.addf %366, %365 : vector<2x32xf32>
    %368 = arith.divf %366, %367 : vector<2x32xf32>
    %369 = vector.extract_strided_slice %356 {offsets = [0, 64], sizes = [2, 32], strides = [1, 1]} : vector<2x128xf32> to vector<2x32xf32>
    %370 = vector.extract_strided_slice %356 {offsets = [0, 96], sizes = [2, 32], strides = [1, 1]} : vector<2x128xf32> to vector<2x32xf32>
    %371 = arith.mulf %362, %370 : vector<2x32xf32>
    %372 = arith.addf %369, %371 : vector<2x32xf32>
    %373 = math.tanh %372 : vector<2x32xf32>
    %cst_68 = arith.constant 1.000000e+00 : f32
    %374 = vector.broadcast %cst_68 : f32 to vector<2x32xf32>
    %375 = arith.subf %374, %368 : vector<2x32xf32>
    %376 = arith.mulf %375, %373 : vector<2x32xf32>
    %377 = arith.mulf %368, %352 : vector<2x32xf32>
    %378 = arith.addf %376, %377 : vector<2x32xf32>
    %cst_69 = arith.constant dense<0.000000e+00> : vector<2x16xf32>
    %379 = tpu.matmul %378, %6, %cst_69 {dimension_numbers = #tpu.dot_dimension_numbers<[1], [0], [0], [1], [0, 0, 1, 1], [], []>} : vector<2x32xf32>, vector<32x16xf32>, vector<2x16xf32> -> vector<2x16xf32>
    %380 = arith.addf %379, %22 : vector<2x16xf32>
    %cst_70 = arith.constant dense<0.000000e+00> : vector<2x128xf32>
    %381 = tpu.matmul %378, %4, %cst_70 {dimension_numbers = #tpu.dot_dimension_numbers<[1], [0], [0], [1], [0, 0, 1, 1], [], []>} : vector<2x32xf32>, vector<32x128xf32>, vector<2x128xf32> -> vector<2x128xf32>
    %382 = arith.addf %381, %18 : vector<2x128xf32>
    %383 = vector.extract_strided_slice %382 {offsets = [0, 0], sizes = [2, 32], strides = [1, 1]} : vector<2x128xf32> to vector<2x32xf32>
    %384 = arith.negf %383 : vector<2x32xf32>
    %385 = math.exp %384 : vector<2x32xf32>
    %cst_71 = arith.constant 1.000000e+00 : f32
    %386 = vector.broadcast %cst_71 : f32 to vector<2x32xf32>
    %387 = arith.addf %386, %385 : vector<2x32xf32>
    %388 = arith.divf %386, %387 : vector<2x32xf32>
    %389 = vector.extract_strided_slice %382 {offsets = [0, 32], sizes = [2, 32], strides = [1, 1]} : vector<2x128xf32> to vector<2x32xf32>
    %390 = arith.negf %389 : vector<2x32xf32>
    %391 = math.exp %390 : vector<2x32xf32>
    %cst_72 = arith.constant 1.000000e+00 : f32
    %392 = vector.broadcast %cst_72 : f32 to vector<2x32xf32>
    %393 = arith.addf %392, %391 : vector<2x32xf32>
    %394 = arith.divf %392, %393 : vector<2x32xf32>
    %395 = vector.extract_strided_slice %382 {offsets = [0, 64], sizes = [2, 32], strides = [1, 1]} : vector<2x128xf32> to vector<2x32xf32>
    %396 = vector.extract_strided_slice %382 {offsets = [0, 96], sizes = [2, 32], strides = [1, 1]} : vector<2x128xf32> to vector<2x32xf32>
    %397 = arith.mulf %388, %396 : vector<2x32xf32>
    %398 = arith.addf %395, %397 : vector<2x32xf32>
    %399 = math.tanh %398 : vector<2x32xf32>
    %cst_73 = arith.constant 1.000000e+00 : f32
    %400 = vector.broadcast %cst_73 : f32 to vector<2x32xf32>
    %401 = arith.subf %400, %394 : vector<2x32xf32>
    %402 = arith.mulf %401, %399 : vector<2x32xf32>
    %403 = arith.mulf %394, %378 : vector<2x32xf32>
    %404 = arith.addf %402, %403 : vector<2x32xf32>
    %cst_74 = arith.constant dense<0.000000e+00> : vector<2x16xf32>
    %405 = tpu.matmul %404, %6, %cst_74 {dimension_numbers = #tpu.dot_dimension_numbers<[1], [0], [0], [1], [0, 0, 1, 1], [], []>} : vector<2x32xf32>, vector<32x16xf32>, vector<2x16xf32> -> vector<2x16xf32>
    %406 = arith.addf %405, %22 : vector<2x16xf32>
    %cst_75 = arith.constant dense<0.000000e+00> : vector<2x128xf32>
    %407 = tpu.matmul %404, %4, %cst_75 {dimension_numbers = #tpu.dot_dimension_numbers<[1], [0], [0], [1], [0, 0, 1, 1], [], []>} : vector<2x32xf32>, vector<32x128xf32>, vector<2x128xf32> -> vector<2x128xf32>
    %408 = arith.addf %407, %18 : vector<2x128xf32>
    %409 = vector.extract_strided_slice %408 {offsets = [0, 0], sizes = [2, 32], strides = [1, 1]} : vector<2x128xf32> to vector<2x32xf32>
    %410 = arith.negf %409 : vector<2x32xf32>
    %411 = math.exp %410 : vector<2x32xf32>
    %cst_76 = arith.constant 1.000000e+00 : f32
    %412 = vector.broadcast %cst_76 : f32 to vector<2x32xf32>
    %413 = arith.addf %412, %411 : vector<2x32xf32>
    %414 = arith.divf %412, %413 : vector<2x32xf32>
    %415 = vector.extract_strided_slice %408 {offsets = [0, 32], sizes = [2, 32], strides = [1, 1]} : vector<2x128xf32> to vector<2x32xf32>
    %416 = arith.negf %415 : vector<2x32xf32>
    %417 = math.exp %416 : vector<2x32xf32>
    %cst_77 = arith.constant 1.000000e+00 : f32
    %418 = vector.broadcast %cst_77 : f32 to vector<2x32xf32>
    %419 = arith.addf %418, %417 : vector<2x32xf32>
    %420 = arith.divf %418, %419 : vector<2x32xf32>
    %421 = vector.extract_strided_slice %408 {offsets = [0, 64], sizes = [2, 32], strides = [1, 1]} : vector<2x128xf32> to vector<2x32xf32>
    %422 = vector.extract_strided_slice %408 {offsets = [0, 96], sizes = [2, 32], strides = [1, 1]} : vector<2x128xf32> to vector<2x32xf32>
    %423 = arith.mulf %414, %422 : vector<2x32xf32>
    %424 = arith.addf %421, %423 : vector<2x32xf32>
    %425 = math.tanh %424 : vector<2x32xf32>
    %cst_78 = arith.constant 1.000000e+00 : f32
    %426 = vector.broadcast %cst_78 : f32 to vector<2x32xf32>
    %427 = arith.subf %426, %420 : vector<2x32xf32>
    %428 = arith.mulf %427, %425 : vector<2x32xf32>
    %429 = arith.mulf %420, %404 : vector<2x32xf32>
    %430 = arith.addf %428, %429 : vector<2x32xf32>
    %cst_79 = arith.constant dense<0.000000e+00> : vector<2x16xf32>
    %431 = tpu.matmul %430, %6, %cst_79 {dimension_numbers = #tpu.dot_dimension_numbers<[1], [0], [0], [1], [0, 0, 1, 1], [], []>} : vector<2x32xf32>, vector<32x16xf32>, vector<2x16xf32> -> vector<2x16xf32>
    %432 = arith.addf %431, %22 : vector<2x16xf32>
    %cst_80 = arith.constant dense<0.000000e+00> : vector<2x128xf32>
    %433 = tpu.matmul %430, %4, %cst_80 {dimension_numbers = #tpu.dot_dimension_numbers<[1], [0], [0], [1], [0, 0, 1, 1], [], []>} : vector<2x32xf32>, vector<32x128xf32>, vector<2x128xf32> -> vector<2x128xf32>
    %434 = arith.addf %433, %18 : vector<2x128xf32>
    %435 = vector.extract_strided_slice %434 {offsets = [0, 0], sizes = [2, 32], strides = [1, 1]} : vector<2x128xf32> to vector<2x32xf32>
    %436 = arith.negf %435 : vector<2x32xf32>
    %437 = math.exp %436 : vector<2x32xf32>
    %cst_81 = arith.constant 1.000000e+00 : f32
    %438 = vector.broadcast %cst_81 : f32 to vector<2x32xf32>
    %439 = arith.addf %438, %437 : vector<2x32xf32>
    %440 = arith.divf %438, %439 : vector<2x32xf32>
    %441 = vector.extract_strided_slice %434 {offsets = [0, 32], sizes = [2, 32], strides = [1, 1]} : vector<2x128xf32> to vector<2x32xf32>
    %442 = arith.negf %441 : vector<2x32xf32>
    %443 = math.exp %442 : vector<2x32xf32>
    %cst_82 = arith.constant 1.000000e+00 : f32
    %444 = vector.broadcast %cst_82 : f32 to vector<2x32xf32>
    %445 = arith.addf %444, %443 : vector<2x32xf32>
    %446 = arith.divf %444, %445 : vector<2x32xf32>
    %447 = vector.extract_strided_slice %434 {offsets = [0, 64], sizes = [2, 32], strides = [1, 1]} : vector<2x128xf32> to vector<2x32xf32>
    %448 = vector.extract_strided_slice %434 {offsets = [0, 96], sizes = [2, 32], strides = [1, 1]} : vector<2x128xf32> to vector<2x32xf32>
    %449 = arith.mulf %440, %448 : vector<2x32xf32>
    %450 = arith.addf %447, %449 : vector<2x32xf32>
    %451 = math.tanh %450 : vector<2x32xf32>
    %cst_83 = arith.constant 1.000000e+00 : f32
    %452 = vector.broadcast %cst_83 : f32 to vector<2x32xf32>
    %453 = arith.subf %452, %446 : vector<2x32xf32>
    %454 = arith.mulf %453, %451 : vector<2x32xf32>
    %455 = arith.mulf %446, %430 : vector<2x32xf32>
    %456 = arith.addf %454, %455 : vector<2x32xf32>
    %cst_84 = arith.constant dense<0.000000e+00> : vector<2x16xf32>
    %457 = tpu.matmul %456, %6, %cst_84 {dimension_numbers = #tpu.dot_dimension_numbers<[1], [0], [0], [1], [0, 0, 1, 1], [], []>} : vector<2x32xf32>, vector<32x16xf32>, vector<2x16xf32> -> vector<2x16xf32>
    %458 = arith.addf %457, %22 : vector<2x16xf32>
    %cst_85 = arith.constant dense<0.000000e+00> : vector<2x128xf32>
    %459 = tpu.matmul %456, %4, %cst_85 {dimension_numbers = #tpu.dot_dimension_numbers<[1], [0], [0], [1], [0, 0, 1, 1], [], []>} : vector<2x32xf32>, vector<32x128xf32>, vector<2x128xf32> -> vector<2x128xf32>
    %460 = arith.addf %459, %18 : vector<2x128xf32>
    %461 = vector.extract_strided_slice %460 {offsets = [0, 0], sizes = [2, 32], strides = [1, 1]} : vector<2x128xf32> to vector<2x32xf32>
    %462 = arith.negf %461 : vector<2x32xf32>
    %463 = math.exp %462 : vector<2x32xf32>
    %cst_86 = arith.constant 1.000000e+00 : f32
    %464 = vector.broadcast %cst_86 : f32 to vector<2x32xf32>
    %465 = arith.addf %464, %463 : vector<2x32xf32>
    %466 = arith.divf %464, %465 : vector<2x32xf32>
    %467 = vector.extract_strided_slice %460 {offsets = [0, 32], sizes = [2, 32], strides = [1, 1]} : vector<2x128xf32> to vector<2x32xf32>
    %468 = arith.negf %467 : vector<2x32xf32>
    %469 = math.exp %468 : vector<2x32xf32>
    %cst_87 = arith.constant 1.000000e+00 : f32
    %470 = vector.broadcast %cst_87 : f32 to vector<2x32xf32>
    %471 = arith.addf %470, %469 : vector<2x32xf32>
    %472 = arith.divf %470, %471 : vector<2x32xf32>
    %473 = vector.extract_strided_slice %460 {offsets = [0, 64], sizes = [2, 32], strides = [1, 1]} : vector<2x128xf32> to vector<2x32xf32>
    %474 = vector.extract_strided_slice %460 {offsets = [0, 96], sizes = [2, 32], strides = [1, 1]} : vector<2x128xf32> to vector<2x32xf32>
    %475 = arith.mulf %466, %474 : vector<2x32xf32>
    %476 = arith.addf %473, %475 : vector<2x32xf32>
    %477 = math.tanh %476 : vector<2x32xf32>
    %cst_88 = arith.constant 1.000000e+00 : f32
    %478 = vector.broadcast %cst_88 : f32 to vector<2x32xf32>
    %479 = arith.subf %478, %472 : vector<2x32xf32>
    %480 = arith.mulf %479, %477 : vector<2x32xf32>
    %481 = arith.mulf %472, %456 : vector<2x32xf32>
    %482 = arith.addf %480, %481 : vector<2x32xf32>
    %cst_89 = arith.constant dense<0.000000e+00> : vector<2x16xf32>
    %483 = tpu.matmul %482, %6, %cst_89 {dimension_numbers = #tpu.dot_dimension_numbers<[1], [0], [0], [1], [0, 0, 1, 1], [], []>} : vector<2x32xf32>, vector<32x16xf32>, vector<2x16xf32> -> vector<2x16xf32>
    %484 = arith.addf %483, %22 : vector<2x16xf32>
    %cst_90 = arith.constant dense<0.000000e+00> : vector<2x128xf32>
    %485 = tpu.matmul %482, %4, %cst_90 {dimension_numbers = #tpu.dot_dimension_numbers<[1], [0], [0], [1], [0, 0, 1, 1], [], []>} : vector<2x32xf32>, vector<32x128xf32>, vector<2x128xf32> -> vector<2x128xf32>
    %486 = arith.addf %485, %18 : vector<2x128xf32>
    %487 = vector.extract_strided_slice %486 {offsets = [0, 0], sizes = [2, 32], strides = [1, 1]} : vector<2x128xf32> to vector<2x32xf32>
    %488 = arith.negf %487 : vector<2x32xf32>
    %489 = math.exp %488 : vector<2x32xf32>
    %cst_91 = arith.constant 1.000000e+00 : f32
    %490 = vector.broadcast %cst_91 : f32 to vector<2x32xf32>
    %491 = arith.addf %490, %489 : vector<2x32xf32>
    %492 = arith.divf %490, %491 : vector<2x32xf32>
    %493 = vector.extract_strided_slice %486 {offsets = [0, 32], sizes = [2, 32], strides = [1, 1]} : vector<2x128xf32> to vector<2x32xf32>
    %494 = arith.negf %493 : vector<2x32xf32>
    %495 = math.exp %494 : vector<2x32xf32>
    %cst_92 = arith.constant 1.000000e+00 : f32
    %496 = vector.broadcast %cst_92 : f32 to vector<2x32xf32>
    %497 = arith.addf %496, %495 : vector<2x32xf32>
    %498 = arith.divf %496, %497 : vector<2x32xf32>
    %499 = vector.extract_strided_slice %486 {offsets = [0, 64], sizes = [2, 32], strides = [1, 1]} : vector<2x128xf32> to vector<2x32xf32>
    %500 = vector.extract_strided_slice %486 {offsets = [0, 96], sizes = [2, 32], strides = [1, 1]} : vector<2x128xf32> to vector<2x32xf32>
    %501 = arith.mulf %492, %500 : vector<2x32xf32>
    %502 = arith.addf %499, %501 : vector<2x32xf32>
    %503 = math.tanh %502 : vector<2x32xf32>
    %cst_93 = arith.constant 1.000000e+00 : f32
    %504 = vector.broadcast %cst_93 : f32 to vector<2x32xf32>
    %505 = arith.subf %504, %498 : vector<2x32xf32>
    %506 = arith.mulf %505, %503 : vector<2x32xf32>
    %507 = arith.mulf %498, %482 : vector<2x32xf32>
    %508 = arith.addf %506, %507 : vector<2x32xf32>
    %cst_94 = arith.constant dense<0.000000e+00> : vector<2x16xf32>
    %509 = tpu.matmul %508, %6, %cst_94 {dimension_numbers = #tpu.dot_dimension_numbers<[1], [0], [0], [1], [0, 0, 1, 1], [], []>} : vector<2x32xf32>, vector<32x16xf32>, vector<2x16xf32> -> vector<2x16xf32>
    %510 = arith.addf %509, %22 : vector<2x16xf32>
    %511 = tpu.concatenate %328, %354, %380, %406, %432, %458, %484, %510 in 1 : vector<2x16xf32>, vector<2x16xf32>, vector<2x16xf32>, vector<2x16xf32>, vector<2x16xf32>, vector<2x16xf32>, vector<2x16xf32>, vector<2x16xf32> -> vector<2x128xf32>
    %c0_95 = arith.constant 0 : index
    %c0_96 = arith.constant 0 : index
    %512 = vector.load %arg3[%c0_95, %c0_96] : memref<2x128xf32, #tpu.memory_space<vmem>>, vector<2x128xf32>
    tpu.vector_store %arg3[%c0_95, %c0_96], %511 {strides = array<i32>} : memref<2x128xf32, #tpu.memory_space<vmem>>, vector<2x128xf32>,
    return
  }
}

</mosaic_0001>

<bundles_post_ra>
// kernel: tpu_custom_call.1
= control target key start
LH: loop header
LB: loop body
LE: loop exit
PB: predicated region body
PF: predicated region fallthrough
CT: control target
= control target key end

     0   :  { %8 = vsyncpa [#allocation3], 0  ;;  %s4343_s0 = inlined_call_operand.hbm [shape: s32[2,8], index: 0, kind: input, shape index: {}]   ;;  %s4344_s1 = inlined_call_operand.vmem [shape: f32[2,16], index: 1, kind: input, shape index: {}]   ;;  %s4345_s2 = inlined_call_operand.hbm [shape: f32[176,128], index: 2, kind: input, shape index: {}]   ;;  %s4346_s3 = inlined_call_operand.hbm [shape: f32[2,128], index: 3, kind: output, shape index: {}]  }
   0x1   :  { %9 = vsyncpa [#allocation6], 0 }
   0x2   :  { %10 = vsyncpa [#allocation4], 0  ;;  %s3863_s12 = smov [#allocation2]   ;;  %s3864_s14 = smov [#allocation5]  }
   0x3   :  { %s17_s13 = sshll.u32 %s3863_s12, 4  ;;  %s28_s15 = sshll.u32 %s3864_s14, 4  ;;  %s18_s13 = int_to_ptr.vmem [resolvable:$true] %s17_s13  ;;  %s3906_s15 = int_to_ptr.vmem [resolvable:$true] %s28_s15 }
   0x4   :  { %s3791_s18 = scalar_lea.hbm %s4343_s0, 32 }
   0x5   :  { %p3792_p0 = scmp.ne.s32.totalorder %s4343_s0, %s3791_s18  ;;  %p3795_p1 = scmp.lt.u32.totalorder %s3791_s18, %s4343_s0 }
   0x7   :  { %p3797_p2 = pnand %p3795_p1, %p3792_p0 }
   0x9   :  { %3800 = shalt.err (!%p3797_p2)
}
   0xa   :  { %s3801_s23 = scalar_lea.vmem %s18_s13, 32  ;;  %p3806_p4 = scmp.lt.s32.totalorder %s18_s13, %s18_s13 }
   0xb   :  { %p3802_p3 = scmp.ne.s32.totalorder %s18_s13, %s3801_s23  ;;  %p3807_p5 = scmp.lt.s32.totalorder %s3801_s23, %s3801_s23 }
   0xd   :  { %p3808_p6 = por %p3807_p5, %p3806_p4 }
   0xf   :  { %p3809_p7 = pnand %p3808_p6, %p3802_p3 }
  0x11   :  { %3812 = shalt.err (!%p3809_p7)
}
  0x12   :  { %20 = dma.hbm_to_vmem [thread:$0]  %s4343_s0, 32, %s18_s13, [#allocation3]  }
  0x13   :  { %s3813_s28 = scalar_lea.hbm %s4345_s2, 2816 }
  0x14   :  { %p3814_p8 = scmp.ne.s32.totalorder %s4345_s2, %s3813_s28  ;;  %p3817_p9 = scmp.lt.u32.totalorder %s3813_s28, %s4345_s2 }
  0x16   :  { %p3819_p10 = pnand %p3817_p9, %p3814_p8 }
  0x18   :  { %3822 = shalt.err (!%p3819_p10)
}
  0x19   :  { %s3823_s6 = scalar_lea.vmem %s3906_s15, 2816  ;;  %p3828_p12 = scmp.lt.s32.totalorder %s3906_s15, %s3906_s15 }
  0x1a   :  { %p3824_p11 = scmp.ne.s32.totalorder %s3906_s15, %s3823_s6  ;;  %p3829_p13 = scmp.lt.s32.totalorder %s3823_s6, %s3823_s6 }
  0x1c   :  { %p3830_p0 = por %p3829_p13, %p3828_p12 }
  0x1e   :  { %p3831_p1 = pnand %p3830_p0, %p3824_p11 }
  0x20   :  { %3834 = shalt.err (!%p3831_p1)
}
  0x21   :  { %s3865_s0 = smov 128   ;;  %s3866_s7 = smov 8  }
  0x22   :  { %34 = dma.hbm_to_vmem [thread:$0]  %s4345_s2, 2816, %s3906_s15, [#allocation6], %s3865_s0, %s3865_s0, %s3866_s7  }
  0x23   :  { %3857 = dma.done.wait [#allocation3], 32  }
  0x24   :  { %3858 = vsyncadd [#allocation3], 4294967264 }
  0x25   :  { %3859 = dma.done.wait [#allocation6], 2816  }
  0x26   :  { %3860 = vsyncadd [#allocation6], 4294964480  ;;  %v3867_v0 = vmov 0   ;;  %v3868_v1 = vmov 0.0|0.0   ;;  %v3939_v2 = vld [vmem:[#allocation2] sm:$0x3]  ;;  %v88_v9 = vlaneseq }
  0x27   :  { %3686 = vset.pattern.permute.xlu0 %v3867_v0  ;;  %3498 = vmatprep.subr.bf16.mxu0 %v3868_v1  ;;  %v41_v3 = vld [vmem:[#allocation5] sm:$0xff]  ;;  %v42_v4 = vld [vmem:[#allocation5 + $0x8] sm:$0xff]  ;;  %vm3869_vm0 = vmmov 0   ;;  %v3870_v6 = vmov 0.0   ;;  %v3953_v8 = vld [vmem:[#allocation5 + $0x10] sm:$0xff]  ;;  %s3871_s2 = smov 64  }
  0x28   :  { %3501 = vmatprep.subr.bf16.mxu1 %v3868_v1  ;;  %91 = vperm.xlu0 %3686, %v3939_v2   ;;  %v3942_v5 = vpack.c.bf16 %v42_v4, %v41_v3  ;;  %v3949_v7 = vld [vmem:[#allocation5 + $0xa8] ss:$0 sm:$0xff]  ;;  %v3962_v10 = vand.u32 127, %v88_v9  ;;  %vm96_vm1 = vcmask 195584   ;;  %v3872_v22 = vmov 2   ;;  %s3874_s10 = smov 96  }
  0x29   :  { %3172 = vmatprep.mubr.msk.f32.mxu0 %vm3869_vm0, %v3870_v6  ;;  %3181 = vmatprep.mubr.msk.f32.mxu1 %vm3869_vm0, %v3870_v6  ;;  %v3873_v23 = vmov 4   ;;  %v3875_v29 = vmov 6   ;;  %v3876_v30 = vmov 1   ;;  %v44_v38 = vld [vmem:[#allocation5 + $0x18] sm:$0xff]  ;;  %v45_v39 = vld [vmem:[#allocation5 + $0x20] sm:$0xff]  ;;  %v46_v43 = vld [vmem:[#allocation5 + $0x28] sm:$0xff] }
  0x2a   :  { %3500 = vmatpush3.bf16.msra.mxu0 %v3942_v5  ;;  %3503 = vmatpush3.bf16.msra.mxu1 %v3942_v5  ;;  %v4001_v41 = vpack.c.bf16 %v45_v39, %v44_v38  ;;  %v47_v44 = vld [vmem:[#allocation5 + $0x30] sm:$0xff]  ;;  %vm752_vm7 = vcmask 261120   ;;  %v3877_v9 = vmov 3   ;;  %vm1458_vm11 = vcmask 130048   ;;  %s3881_s13 = smov 16   ;;  %s3882_s14 = smov 48  }
  0x2b   :  { %3170 = vmatprep.subr.mxu0 %v3870_v6  ;;  %3179 = vmatprep.subr.mxu1 %v3870_v6  ;;  %v4008_v45 = vpack.c.bf16 %v47_v44, %v46_v43  ;;  %s3883_s15 = smov 80   ;;  %s3884_s16 = smov 112   ;;  %vm2928_vm12 = vcmask 392192   ;;  %vm2930_vm13 = vcmask 523264   ;;  %vm2932_vm14 = vcmask 654336  }
  0x2c   :  { %731 = vrot.lane.b32.xlu0 %v3949_v7, %s3871_s2  ;;  %3688 = vset.pattern.permute.xlu1 %v3873_v23  ;;  %vm2934_vm15 = vcmask 785408   ;;  %s3885_s17 = smov [#allocation7]  }
  0x2d   :  { %3687 = vset.pattern.permute.xlu0 %v3872_v22  ;;  %s2945_s18 = sshll.u32 %s3885_s17, 4  ;;  %s2946_s18 = int_to_ptr.vmem [resolvable:$true] %s2945_s18 }
  0x2e   :  { %3171 = vmatpush3.msra.mxu0 %v3953_v8  ;;  %3180 = vmatpush3.msra.mxu1 %v3953_v8  ;;  %s3835_s19 = scalar_lea.vmem %s2946_s18, 32  ;;  %p3840_p3 = scmp.lt.s32.totalorder %s2946_s18, %s2946_s18 }
  0x2f   :  { %3504 = vmatprep.subr.bf16.mxu0 %v3868_v1  ;;  %3507 = vmatprep.subr.bf16.mxu1 %v3868_v1  ;;  %p3836_p2 = scmp.ne.s32.totalorder %s2946_s18, %s3835_s19  ;;  %p3841_p4 = scmp.lt.s32.totalorder %s3835_s19, %s3835_s19 }
  0x30   :  { %250 = vperm.xlu0 %3687, %v3939_v2  }
  0x31   :  { %p3842_p5 = por %p3841_p4, %p3840_p3 }
  0x33   :  { %p3843_p6 = pnand %p3842_p5, %p3836_p2 }
  0xa7   :  { %v92_v11 = vpop.permute.xlu0 %91 }
  0xa8   :  { %vm93_vm2 = vcmp.eq.s32.totalorder %v92_v11, %v3962_v10  ;;  %v3878_v11 = vmov 5  }
  0xa9   :  { %v2960_v12 = vsel %vm93_vm2, 1.0, %v3870_v6  ;;  %3692 = vset.pattern.permute.xlu0 %v3878_v11 }
  0xaa   :  { %3173 = vmatmul.mubr.msk.f32.vlgmr.msra.gmra.mrb[0].mxu0 %vm96_vm1, %v2960_v12  ;;  %v3879_v12 = vmov 7  }
  0xab   :  { %3506 = vmatpush3.bf16.msra.mxu0 %v3942_v5  ;;  %3190 = vmatprep.mubr.msk.f32.mxu0 %vm3869_vm0, %v3870_v6  ;;  %v732_v19 = vpop.permute.xlu0 %731 }
  0xac   :  { %3188 = vmatprep.subr.mxu0 %v3870_v6 }
  0xaf   :  { %3189 = vmatpush3.msra.mxu0 %v3953_v8  ;;  %v251_v27 = vpop.permute.xlu0 %250 }
  0xb0   :  { %3510 = vmatprep.subr.bf16.mxu0 %v3868_v1  ;;  %vm252_vm3 = vcmp.eq.s32.totalorder %v251_v27, %v3962_v10 }
  0xb1   :  { %v2964_v28 = vsel %vm252_vm3, 1.0, %v3870_v6 }
  0xb2   :  { %3191 = vmatmul.mubr.msk.f32.vlgmr.msra.gmra.mrb[2].mxu0 %vm96_vm1, %v2964_v28 }
  0xb3   :  { %3512 = vmatpush3.bf16.msra.mxu0 %v3942_v5  ;;  %3208 = vmatprep.mubr.msk.f32.mxu0 %vm3869_vm0, %v3870_v6 }
  0xb4   :  { %3206 = vmatprep.subr.mxu0 %v3870_v6 }
  0xb7   :  { %3207 = vmatpush3.msra.mxu0 %v3953_v8 }
  0xb8   :  { %3516 = vmatprep.subr.bf16.mxu0 %v3868_v1 }
 0x17d   :  { %v166_v13 = vpop.f32.mrb[0].mxu0 }
 0x17e   :  { %v723_v14 = vadd.f32 %v3949_v7, %v166_v13  ;;  %v3174_v15 = vpop.f32.mrb[1].mxu0 }
 0x180   :  { %v2976_v16 = vmul.f32 -1.442695, %v723_v14 }
 0x182   :  { %3695 = vpow2.f32 %v2976_v16 }
 0x185   :  { %v4024_v48 = vpop.f32.mrb[2].mxu0 }
 0x186   :  { %v3192_v49 = vpop.f32.mrb[3].mxu0 }
 0x18c   :  { %v3696_v17 = vpop.eup %3695 }
 0x18d   :  { %v727_v18 = vadd.f32 1.0, %v3696_v17 }
 0x18f   :  { %3697 = vrcp.f32 %v727_v18 }
 0x199   :  { %v3698_v20 = vpop.eup %3697 }
 0x19a   :  { %v734_v21 = vmul.f32 %v3698_v20, %v732_v19  ;;  %v741_v31 = vsub.f32 1.0, %v3698_v20  ;;  %v747_v33 = vmul.f32 0.0, %v3698_v20 }
 0x19c   :  { %736 = vrot.lane.b32.xlu1 %v734_v21, %s3871_s2 }
 0x20e   :  { %v737_v24 = vpop.permute.xlu1 %736 }
 0x20f   :  { %v739_v25 = vadd.f32 %v737_v24, %v166_v13 }
 0x211   :  { %3699 = vtanh.f32 %v739_v25 }
 0x21b   :  { %v3700_v26 = vpop.eup %3699 }
 0x21c   :  { %743 = vrot.lane.b32.xlu1 %v3700_v26, %s3874_s10 }
 0x220   :  { %408 = vperm.xlu1 %3688, %v3939_v2  }
 0x224   :  { %3689 = vset.pattern.permute.xlu1 %v3875_v29 }
 0x225   :  { %566 = vperm.xlu1 %3689, %v3939_v2  }
 0x229   :  { %3690 = vset.pattern.permute.xlu1 %v3876_v30 }
 0x22a   :  { %171 = vperm.xlu1 %3690, %v3939_v2  }
 0x22e   :  { %3691 = vset.pattern.permute.xlu1 %v3877_v9 }
 0x28e   :  { %v744_v32 = vpop.permute.xlu1 %743 }
 0x28f   :  { %v746_v34 = vmul.f32 %v744_v32, %v741_v31 }
 0x291   :  { %v3989_v35 = vadd.f32 %v747_v33, %v746_v34 }
 0x293   :  { %750 = vrot.lane.b32.xlu0 %v3989_v35, %s3874_s10 }
 0x29f   :  { %v409_v36 = vpop.permute.xlu1 %408 }
 0x2a0   :  { %vm410_vm4 = vcmp.eq.s32.totalorder %v409_v36, %v3962_v10 }
 0x2a1   :  { %v2968_v37 = vsel %vm410_vm4, 1.0, %v3870_v6 }
 0x2a2   :  { %3209 = vmatmul.mubr.msk.f32.vlgmr.msra.gmra.mrb[4].mxu0 %vm96_vm1, %v2968_v37 }
 0x2a3   :  { %3518 = vmatpush3.bf16.msra.mxu0 %v3942_v5  ;;  %3226 = vmatprep.mubr.msk.f32.mxu0 %vm3869_vm0, %v3870_v6 }
 0x2a4   :  { %v567_v40 = vpop.permute.xlu1 %566  ;;  %3224 = vmatprep.subr.mxu0 %v3870_v6 }
 0x2a5   :  { %vm568_vm5 = vcmp.eq.s32.totalorder %v567_v40, %v3962_v10 }
 0x2a6   :  { %v2972_v42 = vsel %vm568_vm5, 1.0, %v3870_v6 }
 0x2a7   :  { %3225 = vmatpush3.msra.mxu0 %v3953_v8 }
 0x2a8   :  { %3227 = vmatmul.mubr.msk.f32.vlgmr.msra.gmra.mrb[6].mxu0 %vm96_vm1, %v2972_v42  ;;  %3522 = vmatprep.subr.bf16.mxu0 %v3868_v1 }
 0x2a9   :  { %3524 = vmatpush3.bf16.msra.mxu0 %v4001_v41  ;;  %3246 = vmatprep.mubr.msk.f32.mxu0 %vm3869_vm0, %v3870_v6  ;;  %v172_v46 = vpop.permute.xlu1 %171 }
 0x2aa   :  { %3525 = vmatprep.subr.bf16.mxu0 %v3868_v1  ;;  %vm173_vm6 = vcmp.eq.s32.totalorder %v172_v46, %v3962_v10 }
 0x2ab   :  { %v2962_v47 = vsel %vm173_vm6, 1.0, %v3870_v6 }
 0x2ac   :  { %3182 = vmatmul.mubr.msk.f32.vlgmr.msra.gmra.mrb[0].mxu1 %vm96_vm1, %v2962_v47 }
 0x2ad   :  { %3527 = vmatpush3.bf16.msra.mxu0 %v4008_v45  ;;  %3509 = vmatpush3.bf16.msra.mxu1 %v3942_v5 }
 0x2ae   :  { %3197 = vmatprep.subr.mxu1 %v3870_v6  ;;  %3199 = vmatprep.mubr.msk.f32.mxu1 %vm3869_vm0, %v3870_v6 }
 0x2af   :  { %3534 = vmatprep.subr.bf16.mxu0 %v3868_v1 }
 0x2b1   :  { %3198 = vmatpush3.msra.mxu1 %v3953_v8 }
 0x2b2   :  { %3513 = vmatprep.subr.bf16.mxu1 %v3868_v1 }
 0x305   :  { %v751_v50 = vpop.permute.xlu0 %750 }
 0x306   :  { %3247 = vmatmul.mubr.msk.f32.vlgmr.msra.gmra.mrb[8].mxu0 %vm752_vm7, %v751_v50 }
 0x307   :  { %3536 = vmatpush3.bf16.msra.mxu0 %v4001_v41  ;;  %3268 = vmatprep.mubr.msk.f32.mxu0 %vm3869_vm0, %v3870_v6 }
 0x308   :  { %3537 = vmatprep.subr.bf16.mxu0 %v3868_v1 }
 0x30b   :  { %3539 = vmatpush3.bf16.msra.mxu0 %v4008_v45 }
 0x30c   :  { %3546 = vmatprep.subr.bf16.mxu0 %v3868_v1 }
 0x375   :  { %v4033_v51 = vpop.f32.mrb[4].mxu0 }
 0x376   :  { %v3210_v52 = vpop.f32.mrb[5].mxu0 }
 0x37b   :  { %v4035_v53 = vpop.f32.mrb[6].mxu0 }
 0x37c   :  { %v3228_v54 = vpop.f32.mrb[7].mxu0 }
 0x37f   :  { %v245_v55 = vpop.f32.mrb[0].mxu1 }
 0x380   :  { %v3183_v56 = vpop.f32.mrb[1].mxu1 }
 0x3d9   :  { %v821_v57 = vpop.f32.mrb[8].mxu0 }
 0x3da   :  { %v822_v58 = vadd.f32 %v3949_v7, %v821_v57  ;;  %v3248_v59 = vpop.f32.mrb[9].mxu0 }
 0x3dc   :  { %v825_v60 = vadd.f32 %v822_v58, %v245_v55  ;;  %833 = vrot.lane.b32.xlu0 %v822_v58, %s3871_s2 }
 0x3de   :  { %v2978_v61 = vmul.f32 -1.442695, %v825_v60 }
 0x3e0   :  { %3701 = vpow2.f32 %v2978_v61 }
 0x3ea   :  { %v3702_v62 = vpop.eup %3701 }
 0x3eb   :  { %v829_v63 = vadd.f32 1.0, %v3702_v62 }
 0x3ed   :  { %3703 = vrcp.f32 %v829_v63 }
 0x3f7   :  { %v3704_v0 = vpop.eup %3703 }
 0x3f8   :  { %v843_v18 = vsub.f32 1.0, %v3704_v0  ;;  %v849_v19 = vmul.f32 %v3704_v0, %v3989_v35 }
 0x44e   :  { %v834_v3 = vpop.permute.xlu0 %833 }
 0x44f   :  { %v836_v4 = vmul.f32 %v3704_v0, %v834_v3 }
 0x451   :  { %838 = vrot.lane.b32.xlu1 %v836_v4, %s3871_s2 }
 0x455   :  { %329 = vperm.xlu1 %3691, %v3939_v2  }
 0x459   :  { %3693 = vset.pattern.permute.xlu1 %v3879_v12 }
 0x45a   :  { %645 = vperm.xlu1 %3693, %v3939_v2  }
 0x4c3   :  { %v839_v13 = vpop.permute.xlu1 %838 }
 0x4c4   :  { %v841_v14 = vadd.f32 %v839_v13, %v245_v55 }
 0x4c6   :  { %3705 = vtanh.f32 %v841_v14 }
 0x4d0   :  { %v3706_v15 = vpop.eup %3705 }
 0x4d1   :  { %845 = vrot.lane.b32.xlu0 %v3706_v15, %s3874_s10 }
 0x4d4   :  { %v330_v16 = vpop.permute.xlu1 %329 }
 0x4d5   :  { %487 = vperm.xlu0 %3692, %v3939_v2   ;;  %vm331_vm8 = vcmp.eq.s32.totalorder %v330_v16, %v3962_v10 }
 0x4d6   :  { %v2966_v17 = vsel %vm331_vm8, 1.0, %v3870_v6 }
 0x4d7   :  { %3200 = vmatmul.mubr.msk.f32.vlgmr.msra.gmra.mrb[2].mxu1 %vm96_vm1, %v2966_v17 }
 0x4d8   :  { %3515 = vmatpush3.bf16.msra.mxu1 %v3942_v5  ;;  %3217 = vmatprep.mubr.msk.f32.mxu1 %vm3869_vm0, %v3870_v6 }
 0x4d9   :  { %3215 = vmatprep.subr.mxu1 %v3870_v6  ;;  %3694 = vset.pattern.permute.xlu0 %v3879_v12  ;;  %v646_v23 = vpop.permute.xlu1 %645 }
 0x4da   :  { %vm647_vm10 = vcmp.eq.s32.totalorder %v646_v23, %v3962_v10 }
 0x4db   :  { %v2974_v25 = vsel %vm647_vm10, 1.0, %v3870_v6 }
 0x4dc   :  { %3216 = vmatpush3.msra.mxu1 %v3953_v8 }
 0x4dd   :  { %3519 = vmatprep.subr.bf16.mxu1 %v3868_v1 }
 0x543   :  { %v846_v2 = vpop.permute.xlu0 %845 }
 0x544   :  { %v848_v20 = vmul.f32 %v846_v2, %v843_v18 }
 0x546   :  { %v850_v21 = vadd.f32 %v849_v19, %v848_v20 }
 0x548   :  { %852 = vrot.lane.b32.xlu1 %v850_v21, %s3874_s10 }
 0x554   :  { %v488_v22 = vpop.permute.xlu0 %487 }
 0x555   :  { %vm489_vm9 = vcmp.eq.s32.totalorder %v488_v22, %v3962_v10 }
 0x556   :  { %v2970_v24 = vsel %vm489_vm9, 1.0, %v3870_v6 }
 0x557   :  { %3218 = vmatmul.mubr.msk.f32.vlgmr.msra.gmra.mrb[4].mxu1 %vm96_vm1, %v2970_v24 }
 0x558   :  { %3521 = vmatpush3.bf16.msra.mxu1 %v3942_v5  ;;  %3235 = vmatprep.mubr.msk.f32.mxu1 %vm3869_vm0, %v3870_v6 }
 0x559   :  { %3233 = vmatprep.subr.mxu1 %v3870_v6 }
 0x55c   :  { %3234 = vmatpush3.msra.mxu1 %v3953_v8 }
 0x55d   :  { %3236 = vmatmul.mubr.msk.f32.vlgmr.msra.gmra.mrb[6].mxu1 %vm96_vm1, %v2974_v25  ;;  %3528 = vmatprep.subr.bf16.mxu1 %v3868_v1 }
 0x55e   :  { %3530 = vmatpush3.bf16.msra.mxu1 %v4001_v41  ;;  %3257 = vmatprep.mubr.msk.f32.mxu1 %vm3869_vm0, %v3870_v6 }
 0x55f   :  { %3531 = vmatprep.subr.bf16.mxu1 %v3868_v1 }
 0x562   :  { %3533 = vmatpush3.bf16.msra.mxu1 %v4008_v45 }
 0x563   :  { %3540 = vmatprep.subr.bf16.mxu1 %v3868_v1 }
 0x5aa   :  { %v403_v5 = vpop.f32.mrb[2].mxu1 }
 0x5ab   :  { %v3201_v10 = vpop.f32.mrb[3].mxu1 }
 0x5ba   :  { %v853_v26 = vpop.permute.xlu1 %852 }
 0x5bb   :  { %3258 = vmatmul.mubr.msk.f32.vlgmr.msra.gmra.mrb[8].mxu1 %vm752_vm7, %v853_v26 }
 0x5bc   :  { %3542 = vmatpush3.bf16.msra.mxu1 %v4001_v41  ;;  %3279 = vmatprep.mubr.msk.f32.mxu1 %vm3869_vm0, %v3870_v6 }
 0x5bd   :  { %3543 = vmatprep.subr.bf16.mxu1 %v3868_v1 }
 0x5c0   :  { %3545 = vmatpush3.bf16.msra.mxu1 %v4008_v45 }
 0x5c1   :  { %3552 = vmatprep.subr.bf16.mxu1 %v3868_v1 }
 0x62a   :  { %v4080_v8 = vpop.f32.mrb[4].mxu1 }
 0x62b   :  { %v3219_v27 = vpop.f32.mrb[5].mxu1 }
 0x630   :  { %v4082_v28 = vpop.f32.mrb[6].mxu1 }
 0x631   :  { %v3237_v29 = vpop.f32.mrb[7].mxu1 }
 0x68e   :  { %v922_v30 = vpop.f32.mrb[8].mxu1 }
 0x68f   :  { %v923_v31 = vadd.f32 %v3949_v7, %v922_v30  ;;  %v3259_v32 = vpop.f32.mrb[9].mxu1 }
 0x691   :  { %v926_v33 = vadd.f32 %v923_v31, %v4024_v48  ;;  %934 = vrot.lane.b32.xlu0 %v923_v31, %s3871_s2 }
 0x693   :  { %v2980_v34 = vmul.f32 -1.442695, %v926_v33 }
 0x695   :  { %3707 = vpow2.f32 %v2980_v34 }
 0x69f   :  { %v3708_v35 = vpop.eup %3707 }
 0x6a0   :  { %v930_v36 = vadd.f32 1.0, %v3708_v35 }
 0x6a2   :  { %3709 = vrcp.f32 %v930_v36 }
 0x6ac   :  { %v3710_v37 = vpop.eup %3709 }
 0x6ad   :  { %v944_v44 = vsub.f32 1.0, %v3710_v37  ;;  %v950_v47 = vmul.f32 %v3710_v37, %v850_v21 }
 0x703   :  { %v935_v38 = vpop.permute.xlu0 %934 }
 0x704   :  { %v937_v39 = vmul.f32 %v3710_v37, %v935_v38 }
 0x706   :  { %939 = vrot.lane.b32.xlu1 %v937_v39, %s3871_s2 }
 0x778   :  { %v940_v40 = vpop.permute.xlu1 %939 }
 0x779   :  { %v942_v42 = vadd.f32 %v940_v40, %v4024_v48 }
 0x77b   :  { %3711 = vtanh.f32 %v942_v42 }
 0x785   :  { %v3712_v43 = vpop.eup %3711 }
 0x786   :  { %946 = vrot.lane.b32.xlu0 %v3712_v43, %s3874_s10 }
 0x7f8   :  { %v947_v46 = vpop.permute.xlu0 %946 }
 0x7f9   :  { %v949_v49 = vmul.f32 %v947_v46, %v944_v44 }
 0x7fb   :  { %v951_v50 = vadd.f32 %v950_v47, %v949_v49 }
 0x7fd   :  { %953 = vrot.lane.b32.xlu1 %v951_v50, %s3874_s10 }
 0x86f   :  { %v954_v52 = vpop.permute.xlu1 %953 }
 0x870   :  { %3269 = vmatmul.mubr.msk.f32.vlgmr.msra.gmra.mrb[10].mxu0 %vm752_vm7, %v954_v52 }
 0x871   :  { %3548 = vmatpush3.bf16.msra.mxu0 %v4001_v41  ;;  %3290 = vmatprep.mubr.msk.f32.mxu0 %vm3869_vm0, %v3870_v6 }
 0x872   :  { %3549 = vmatprep.subr.bf16.mxu0 %v3868_v1 }
 0x875   :  { %3551 = vmatpush3.bf16.msra.mxu0 %v4008_v45 }
 0x876   :  { %3558 = vmatprep.subr.bf16.mxu0 %v3868_v1 }
 0x943   :  { %v1023_v48 = vpop.f32.mrb[10].mxu0 }
 0x944   :  { %v1024_v54 = vadd.f32 %v3949_v7, %v1023_v48  ;;  %v3270_v55 = vpop.f32.mrb[11].mxu0 }
 0x946   :  { %v1027_v56 = vadd.f32 %v1024_v54, %v403_v5  ;;  %1035 = vrot.lane.b32.xlu0 %v1024_v54, %s3871_s2 }
 0x948   :  { %v2982_v57 = vmul.f32 -1.442695, %v1027_v56 }
 0x94a   :  { %3713 = vpow2.f32 %v2982_v57 }
 0x954   :  { %v3714_v58 = vpop.eup %3713 }
 0x955   :  { %v1031_v59 = vadd.f32 1.0, %v3714_v58 }
 0x957   :  { %3715 = vrcp.f32 %v1031_v59 }
 0x961   :  { %v3716_v60 = vpop.eup %3715 }
 0x962   :  { %v1045_v4 = vsub.f32 1.0, %v3716_v60  ;;  %v1051_v11 = vmul.f32 %v3716_v60, %v951_v50 }
 0x9b8   :  { %v1036_v61 = vpop.permute.xlu0 %1035 }
 0x9b9   :  { %v1038_v62 = vmul.f32 %v3716_v60, %v1036_v61 }
 0x9bb   :  { %1040 = vrot.lane.b32.xlu1 %v1038_v62, %s3871_s2 }
 0xa2d   :  { %v1041_v63 = vpop.permute.xlu1 %1040 }
 0xa2e   :  { %v1043_v0 = vadd.f32 %v1041_v63, %v403_v5 }
 0xa30   :  { %3717 = vtanh.f32 %v1043_v0 }
 0xa3a   :  { %v3718_v3 = vpop.eup %3717 }
 0xa3b   :  { %1047 = vrot.lane.b32.xlu0 %v3718_v3, %s3874_s10 }
 0xaad   :  { %v1048_v9 = vpop.permute.xlu0 %1047 }
 0xaae   :  { %v1050_v12 = vmul.f32 %v1048_v9, %v1045_v4 }
 0xab0   :  { %v1052_v13 = vadd.f32 %v1051_v11, %v1050_v12 }
 0xab2   :  { %1054 = vrot.lane.b32.xlu1 %v1052_v13, %s3874_s10 }
 0xb24   :  { %v1055_v14 = vpop.permute.xlu1 %1054 }
 0xb25   :  { %3280 = vmatmul.mubr.msk.f32.vlgmr.msra.gmra.mrb[10].mxu1 %vm752_vm7, %v1055_v14 }
 0xb26   :  { %3554 = vmatpush3.bf16.msra.mxu1 %v4001_v41  ;;  %3301 = vmatprep.mubr.msk.f32.mxu1 %vm3869_vm0, %v3870_v6 }
 0xb27   :  { %3555 = vmatprep.subr.bf16.mxu1 %v3868_v1 }
 0xb2a   :  { %3557 = vmatpush3.bf16.msra.mxu1 %v4008_v45 }
 0xb2b   :  { %3564 = vmatprep.subr.bf16.mxu1 %v3868_v1 }
 0xbf8   :  { %v1124_v15 = vpop.f32.mrb[10].mxu1 }
 0xbf9   :  { %v1125_v16 = vadd.f32 %v3949_v7, %v1124_v15  ;;  %v3281_v17 = vpop.f32.mrb[11].mxu1 }
 0xbfb   :  { %v1128_v18 = vadd.f32 %v1125_v16, %v4033_v51  ;;  %1136 = vrot.lane.b32.xlu0 %v1125_v16, %s3871_s2 }
 0xbfd   :  { %v2984_v2 = vmul.f32 -1.442695, %v1128_v18 }
 0xbff   :  { %3719 = vpow2.f32 %v2984_v2 }
 0xc09   :  { %v3720_v19 = vpop.eup %3719 }
 0xc0a   :  { %v1132_v20 = vadd.f32 1.0, %v3720_v19 }
 0xc0c   :  { %3721 = vrcp.f32 %v1132_v20 }
 0xc16   :  { %v3722_v21 = vpop.eup %3721 }
 0xc17   :  { %v1146_v10 = vsub.f32 1.0, %v3722_v21  ;;  %v1152_v27 = vmul.f32 %v3722_v21, %v1052_v13 }
 0xc6d   :  { %v1137_v22 = vpop.permute.xlu0 %1136 }
 0xc6e   :  { %v1139_v23 = vmul.f32 %v3722_v21, %v1137_v22 }
 0xc70   :  { %1141 = vrot.lane.b32.xlu1 %v1139_v23, %s3871_s2  ;;  %v49_v23 = vld [vmem:[#allocation5 + $0x40] sm:$0xff] }
 0xce2   :  { %v1142_v24 = vpop.permute.xlu1 %1141 }
 0xce3   :  { %v1144_v25 = vadd.f32 %v1142_v24, %v4033_v51 }
 0xce5   :  { %3723 = vtanh.f32 %v1144_v25  ;;  %v50_v25 = vld [vmem:[#allocation5 + $0x48] sm:$0xff] }
 0xcef   :  { %v3724_v5 = vpop.eup %3723 }
 0xcf0   :  { %1148 = vrot.lane.b32.xlu0 %v3724_v5, %s3874_s10  ;;  %v51_v5 = vld [vmem:[#allocation5 + $0x50] sm:$0xff] }
 0xd62   :  { %v1149_v26 = vpop.permute.xlu0 %1148 }
 0xd63   :  { %v1151_v29 = vmul.f32 %v1149_v26, %v1146_v10  ;;  %v1457_v10 = vld [vmem:[%s4344_s1] sm:$0x3]  ;;  %v3568_v26 = vpack.c.bf16 %v51_v5, %v50_v25  ;;  %s3880_s1 = smov 32  }
 0xd65   :  { %v1153_v30 = vadd.f32 %v1152_v27, %v1151_v29  ;;  %v52_v27 = vld [vmem:[#allocation5 + $0x58] sm:$0xff]  ;;  %v53_v29 = vld [vmem:[#allocation5 + $0x60] sm:$0xff] }
 0xd67   :  { %1155 = vrot.lane.b32.xlu1 %v1153_v30, %s3874_s10 }
 0xdd9   :  { %v1156_v31 = vpop.permute.xlu1 %1155 }
 0xdda   :  { %3291 = vmatmul.mubr.msk.f32.vlgmr.msra.gmra.mrb[12].mxu0 %vm752_vm7, %v1156_v31 }
 0xddb   :  { %3560 = vmatpush3.bf16.msra.mxu0 %v4001_v41  ;;  %3312 = vmatprep.mubr.msk.f32.mxu0 %vm3869_vm0, %v3870_v6 }
 0xddc   :  { %3561 = vmatprep.subr.bf16.mxu0 %v3868_v1 }
 0xddf   :  { %3563 = vmatpush3.bf16.msra.mxu0 %v4008_v45 }
 0xde0   :  { %3573 = vmatprep.subr.bf16.mxu0 %v3868_v1 }
 0xead   :  { %v1225_v51 = vpop.f32.mrb[12].mxu0 }
 0xeae   :  { %v1226_v32 = vadd.f32 %v3949_v7, %v1225_v51  ;;  %v3292_v33 = vpop.f32.mrb[13].mxu0 }
 0xeb0   :  { %v1229_v34 = vadd.f32 %v1226_v32, %v4080_v8  ;;  %1237 = vrot.lane.b32.xlu0 %v1226_v32, %s3871_s2 }
 0xeb2   :  { %v2986_v35 = vmul.f32 -1.442695, %v1229_v34 }
 0xeb4   :  { %3725 = vpow2.f32 %v2986_v35 }
 0xebe   :  { %v3726_v41 = vpop.eup %3725 }
 0xebf   :  { %v1233_v36 = vadd.f32 1.0, %v3726_v41 }
 0xec1   :  { %3727 = vrcp.f32 %v1233_v36 }
 0xecb   :  { %v3728_v37 = vpop.eup %3727 }
 0xecc   :  { %v1247_v43 = vsub.f32 1.0, %v3728_v37  ;;  %v1253_v46 = vmul.f32 %v3728_v37, %v1153_v30 }
 0xf22   :  { %v1238_v38 = vpop.permute.xlu0 %1237 }
 0xf23   :  { %v1240_v39 = vmul.f32 %v3728_v37, %v1238_v38  ;;  %v2957_v37 = vld [vmem:[#allocation5 + $0xaa] ss:$0 sm:$0xff] }
 0xf25   :  { %1242 = vrot.lane.b32.xlu1 %v1240_v39, %s3871_s2 }
 0xf97   :  { %v1243_v45 = vpop.permute.xlu1 %1242 }
 0xf98   :  { %v1245_v40 = vadd.f32 %v1243_v45, %v4080_v8 }
 0xf9a   :  { %3729 = vtanh.f32 %v1245_v40  ;;  %v2956_v40 = vld [vmem:[#allocation5 + $0xa9] ss:$0 sm:$0xff] }
 0xfa4   :  { %v3730_v42 = vpop.eup %3729 }
 0xfa5   :  { %1249 = vrot.lane.b32.xlu0 %v3730_v42, %s3874_s10 }
0x1017   :  { %v1250_v44 = vpop.permute.xlu0 %1249 }
0x1018   :  { %v1252_v47 = vmul.f32 %v1250_v44, %v1247_v43 }
0x101a   :  { %v1254_v49 = vadd.f32 %v1253_v46, %v1252_v47 }
0x101c   :  { %1256 = vrot.lane.b32.xlu1 %v1254_v49, %s3874_s10 }
0x108e   :  { %v1257_v50 = vpop.permute.xlu1 %1256 }
0x108f   :  { %3302 = vmatmul.mubr.msk.f32.vlgmr.msra.gmra.mrb[12].mxu1 %vm752_vm7, %v1257_v50 }
0x1090   :  { %3319 = vmatprep.mubr.msk.f32.mxu1 %vm3869_vm0, %v3870_v6 }
0x1162   :  { %v1326_v52 = vpop.f32.mrb[12].mxu1 }
0x1163   :  { %v1327_v8 = vadd.f32 %v3949_v7, %v1326_v52  ;;  %v3303_v48 = vpop.f32.mrb[13].mxu1 }
0x1165   :  { %v1330_v54 = vadd.f32 %v1327_v8, %v4035_v53  ;;  %1338 = vrot.lane.b32.xlu0 %v1327_v8, %s3871_s2 }
0x1167   :  { %v2988_v55 = vmul.f32 -1.442695, %v1330_v54  ;;  %v58_v54 = vld [vmem:[#allocation5 + $0x88] sm:$0xff] }
0x1169   :  { %3731 = vpow2.f32 %v2988_v55  ;;  %v59_v55 = vld [vmem:[#allocation5 + $0x90] sm:$0xff] }
0x1173   :  { %v3732_v56 = vpop.eup %3731 }
0x1174   :  { %v1334_v57 = vadd.f32 1.0, %v3732_v56  ;;  %v54_v56 = vld [vmem:[#allocation5 + $0x68] sm:$0xff] }
0x1176   :  { %3733 = vrcp.f32 %v1334_v57  ;;  %v4165_v57 = vpack.c.bf16 %v59_v55, %v58_v54 }
0x1180   :  { %v3734_v58 = vpop.eup %3733 }
0x1181   :  { %v1348_v0 = vsub.f32 1.0, %v3734_v58  ;;  %v1354_v4 = vmul.f32 %v3734_v58, %v1254_v49 }
0x11d7   :  { %v1339_v59 = vpop.permute.xlu0 %1338 }
0x11d8   :  { %v1341_v60 = vmul.f32 %v3734_v58, %v1339_v59  ;;  %v55_v58 = vld [vmem:[#allocation5 + $0x70] sm:$0xff]  ;;  %v60_v59 = vld [vmem:[#allocation5 + $0x98] sm:$0xff] }
0x11da   :  { %1343 = vrot.lane.b32.xlu1 %v1341_v60, %s3871_s2  ;;  %v61_v60 = vld [vmem:[#allocation5 + $0xa0] sm:$0xff] }
0x124c   :  { %v1344_v61 = vpop.permute.xlu1 %1343 }
0x124d   :  { %v1346_v62 = vadd.f32 %v1344_v61, %v4035_v53  ;;  %v4167_v61 = vpack.c.bf16 %v55_v58, %v54_v56 }
0x124f   :  { %3735 = vtanh.f32 %v1346_v62  ;;  %v56_v62 = vld [vmem:[#allocation5 + $0x78] sm:$0xff] }
0x1259   :  { %v3736_v63 = vpop.eup %3735 }
0x125a   :  { %1350 = vrot.lane.b32.xlu0 %v3736_v63, %s3874_s10  ;;  %v57_v63 = vld [vmem:[#allocation5 + $0x80] sm:$0xff] }
0x12cc   :  { %v1351_v3 = vpop.permute.xlu0 %1350 }
0x12cd   :  { %v1353_v9 = vmul.f32 %v1351_v3, %v1348_v0  ;;  %v4170_v0 = vpack.c.bf16 %v61_v60, %v60_v59  ;;  %v4174_v3 = vpack.c.bf16 %v57_v63, %v56_v62 }
0x12cf   :  { %v1355_v11 = vadd.f32 %v1354_v4, %v1353_v9 }
0x12d1   :  { %1357 = vrot.lane.b32.xlu1 %v1355_v11, %s3874_s10 }
0x1343   :  { %v1358_v12 = vpop.permute.xlu1 %1357 }
0x1344   :  { %3313 = vmatmul.mubr.msk.f32.vlgmr.msra.gmra.mrb[14].mxu0 %vm752_vm7, %v1358_v12 }
0x1345   :  { %3341 = vmatprep.mubr.msk.f32.mxu0 %vm3869_vm0, %v3870_v6  ;;  %3575 = vmatpush3.bf16.msra.mxu0 %v4165_v57 }
0x1346   :  { %3576 = vmatprep.subr.bf16.mxu0 %v3868_v1 }
0x1349   :  { %3578 = vmatpush3.bf16.msra.mxu0 %v4170_v0 }
0x134a   :  { %3585 = vmatprep.subr.bf16.mxu0 %v3868_v1 }
0x1417   :  { %v1427_v13 = vpop.f32.mrb[14].mxu0 }
0x1418   :  { %v1428_v53 = vadd.f32 %v3949_v7, %v1427_v13  ;;  %v3314_v14 = vpop.f32.mrb[15].mxu0  ;;  %v48_v7 = vld [vmem:[#allocation5 + $0x38] sm:$0xff] }
0x1419   :  { %v3565_v24 = vpack.c.bf16 %v49_v23, %v48_v7 }
0x141a   :  { %v1431_v15 = vadd.f32 %v1428_v53, %v4082_v28  ;;  %1439 = vrot.lane.b32.xlu0 %v1428_v53, %s3871_s2 }
0x141b   :  { %3566 = vmatpush3.bf16.msra.mxu1 %v3565_v24 }
0x141c   :  { %v2990_v16 = vmul.f32 -1.442695, %v1431_v15  ;;  %3567 = vmatprep.subr.bf16.mxu1 %v3868_v1  ;;  %v4197_v15 = vld [vmem:[#allocation5 + $0xab] ss:$0 sm:$0xff] }
0x141e   :  { %3737 = vpow2.f32 %v2990_v16  ;;  %3320 = vmatmul.mubr.msk.f32.vlgmr.msra.gmra.mrb[14].mxu1 %vm1458_vm11, %v1457_v10 }
0x141f   :  { %3569 = vmatpush3.bf16.msra.mxu1 %v3568_v26  ;;  %3330 = vmatprep.mubr.msk.f32.mxu1 %vm3869_vm0, %v3870_v6 }
0x1420   :  { %3570 = vmatprep.subr.bf16.mxu1 %v3868_v1 }
0x1428   :  { %v3738_v17 = vpop.eup %3737 }
0x1429   :  { %v1435_v18 = vadd.f32 1.0, %v3738_v17 }
0x142b   :  { %3739 = vrcp.f32 %v1435_v18 }
0x1435   :  { %v3740_v2 = vpop.eup %3739 }
0x1436   :  { %v1449_v31 = vsub.f32 1.0, %v3740_v2  ;;  %v1455_v32 = vmul.f32 %v3740_v2, %v1355_v11 }
0x148c   :  { %v1440_v19 = vpop.permute.xlu0 %1439 }
0x148d   :  { %v1442_v20 = vmul.f32 %v3740_v2, %v1440_v19 }
0x148f   :  { %1444 = vrot.lane.b32.xlu1 %v1442_v20, %s3871_s2 }
0x14f1   :  { %v1528_v35 = vpop.f32.mrb[14].mxu1 }
0x14f2   :  { %v3321_v41 = vpop.f32.mrb[15].mxu1  ;;  %v1529_v42 = vadd.f32 %v2956_v40, %v1528_v35 }
0x1501   :  { %v1445_v21 = vpop.permute.xlu1 %1444 }
0x1502   :  { %v1447_v22 = vadd.f32 %v1445_v21, %v4082_v28  ;;  %v3571_v28 = vpack.c.bf16 %v53_v29, %v52_v27 }
0x1504   :  { %3741 = vtanh.f32 %v1447_v22  ;;  %3572 = vmatpush3.bf16.msra.mxu1 %v3571_v28 }
0x1505   :  { %3579 = vmatprep.subr.bf16.mxu1 %v3868_v1 }
0x150e   :  { %v3742_v30 = vpop.eup %3741 }
0x150f   :  { %1451 = vrot.lane.b32.xlu0 %v3742_v30, %s3874_s10 }
0x1581   :  { %v1452_v51 = vpop.permute.xlu0 %1451 }
0x1582   :  { %v1454_v33 = vmul.f32 %v1452_v51, %v1449_v31 }
0x1584   :  { %v1456_v34 = vadd.f32 %v1455_v32, %v1454_v33 }
0x1586   :  { %1533 = vrot.lane.b32.xlu1 %v1456_v34, %s3874_s10 }
0x15f8   :  { %v1534_v36 = vpop.permute.xlu1 %1533 }
0x15f9   :  { %3331 = vmatmul.mubr.msk.f32.vlgmr.msra.gmra.mrb[16].mxu1 %vm752_vm7, %v1534_v36 }
0x15fa   :  { %3352 = vmatprep.mubr.msk.f32.mxu1 %vm3869_vm0, %v3870_v6  ;;  %3581 = vmatpush3.bf16.msra.mxu1 %v4167_v61 }
0x15fb   :  { %3582 = vmatprep.subr.bf16.mxu1 %v3868_v1 }
0x15fe   :  { %3584 = vmatpush3.bf16.msra.mxu1 %v4174_v3 }
0x15ff   :  { %3591 = vmatprep.subr.bf16.mxu1 %v3868_v1 }
0x16cc   :  { %v1603_v38 = vpop.f32.mrb[16].mxu1 }
0x16cd   :  { %v1604_v39 = vadd.f32 %v2957_v37, %v1603_v38  ;;  %v3332_v45 = vpop.f32.mrb[17].mxu1 }
0x16cf   :  { %1615 = vrot.lane.b32.xlu0 %v1604_v39, %s3871_s2  ;;  %v1607_v43 = vadd.f32 %v1604_v39, %v1529_v42 }
0x16d1   :  { %v2993_v44 = vmul.f32 -1.442695, %v1607_v43 }
0x16d3   :  { %3743 = vpow2.f32 %v2993_v44 }
0x16dd   :  { %v3744_v46 = vpop.eup %3743 }
0x16de   :  { %v1611_v47 = vadd.f32 1.0, %v3744_v46 }
0x16e0   :  { %3745 = vrcp.f32 %v1611_v47 }
0x16ea   :  { %v3746_v49 = vpop.eup %3745 }
0x16eb   :  { %v1625_v9 = vsub.f32 1.0, %v3746_v49  ;;  %v1631_v12 = vmul.f32 %v3746_v49, %v1456_v34 }
0x1741   :  { %v1616_v50 = vpop.permute.xlu0 %1615 }
0x1742   :  { %v1618_v52 = vmul.f32 %v3746_v49, %v1616_v50 }
0x1744   :  { %1620 = vrot.lane.b32.xlu1 %v1618_v52, %s3871_s2 }
0x17b6   :  { %v1621_v8 = vpop.permute.xlu1 %1620 }
0x17b7   :  { %v1623_v48 = vadd.f32 %v1621_v8, %v1529_v42 }
0x17b9   :  { %3747 = vtanh.f32 %v1623_v48 }
0x17c3   :  { %v3748_v4 = vpop.eup %3747 }
0x17c4   :  { %1627 = vrot.lane.b32.xlu0 %v3748_v4, %s3874_s10 }
0x1836   :  { %v1628_v11 = vpop.permute.xlu0 %1627 }
0x1837   :  { %v1630_v13 = vmul.f32 %v1628_v11, %v1625_v9 }
0x1839   :  { %v1632_v53 = vadd.f32 %v1631_v12, %v1630_v13 }
0x183b   :  { %1634 = vrot.lane.b32.xlu1 %v1632_v53, %s3874_s10 }
0x18ad   :  { %v1635_v14 = vpop.permute.xlu1 %1634 }
0x18ae   :  { %3342 = vmatmul.mubr.msk.f32.vlgmr.msra.gmra.mrb[16].mxu0 %vm752_vm7, %v1635_v14  ;;  %3353 = vmatmul.mubr.msk.f32.vlgmr.msra.gmra.mrb[18].mxu1 %vm752_vm7, %v1635_v14 }
0x18af   :  { %3587 = vmatpush3.bf16.msra.mxu0 %v4165_v57  ;;  %3593 = vmatpush3.bf16.msra.mxu1 %v4167_v61 }
0x18b0   :  { %3588 = vmatprep.subr.bf16.mxu0 %v3868_v1  ;;  %3594 = vmatprep.subr.bf16.mxu1 %v3868_v1 }
0x18b1   :  { %3363 = vmatprep.mubr.msk.f32.mxu0 %vm3869_vm0, %v3870_v6  ;;  %3374 = vmatprep.mubr.msk.f32.mxu1 %vm3869_vm0, %v3870_v6 }
0x18b3   :  { %3590 = vmatpush3.bf16.msra.mxu0 %v4170_v0  ;;  %3596 = vmatpush3.bf16.msra.mxu1 %v4174_v3 }
0x18b4   :  { %3597 = vmatprep.subr.bf16.mxu0 %v3868_v1  ;;  %3603 = vmatprep.subr.bf16.mxu1 %v3868_v1 }
0x1981   :  { %v4199_v16 = vpop.f32.mrb[16].mxu0  ;;  %v1774_v17 = vpop.f32.mrb[18].mxu1 }
0x1982   :  { %v1775_v18 = vadd.f32 %v4197_v15, %v1774_v17  ;;  %v3343_v2 = vpop.f32.mrb[17].mxu0  ;;  %v3354_v19 = vpop.f32.mrb[19].mxu1 }
0x1984   :  { %1785 = vrot.lane.b32.xlu0 %v1775_v18, %s3880_s1  ;;  %v2996_v20 = vmul.f32 -1.442695, %v1775_v18 }
0x1986   :  { %3749 = vpow2.f32 %v2996_v20 }
0x1990   :  { %v3750_v21 = vpop.eup %3749 }
0x1991   :  { %v1781_v22 = vadd.f32 1.0, %v3750_v21 }
0x1993   :  { %3751 = vrcp.f32 %v1781_v22 }
0x199d   :  { %v3752_v7 = vpop.eup %3751 }
0x199e   :  { %v1795_v26 = vsub.f32 1.0, %v3752_v7  ;;  %v1801_v29 = vmul.f32 %v3752_v7, %v1632_v53 }
0x19f6   :  { %v1786_v23 = vpop.permute.xlu0 %1785 }
0x19f7   :  { %v1788_v24 = vmul.f32 %v3752_v7, %v1786_v23 }
0x19f9   :  { %1790 = vrot.lane.b32.xlu1 %v1788_v24, %s3871_s2 }
0x1a6b   :  { %v1791_v25 = vpop.permute.xlu1 %1790 }
0x1a6c   :  { %v1793_v5 = vadd.f32 %v1791_v25, %v1775_v18 }
0x1a6e   :  { %3753 = vtanh.f32 %v1793_v5 }
0x1a78   :  { %v3754_v10 = vpop.eup %3753 }
0x1a79   :  { %1797 = vrot.lane.b32.xlu0 %v3754_v10, %s3874_s10 }
0x1aeb   :  { %v1798_v27 = vpop.permute.xlu0 %1797 }
0x1aec   :  { %v1800_v28 = vmul.f32 %v1798_v27, %v1795_v26 }
0x1aee   :  { %v1802_v30 = vadd.f32 %v1801_v29, %v1800_v28 }
0x1af0   :  { %1804 = vrot.lane.b32.xlu1 %v1802_v30, %s3874_s10 }
0x1b62   :  { %v1805_v31 = vpop.permute.xlu1 %1804 }
0x1b63   :  { %3364 = vmatmul.mubr.msk.f32.vlgmr.msra.gmra.mrb[18].mxu0 %vm752_vm7, %v1805_v31  ;;  %3375 = vmatmul.mubr.msk.f32.vlgmr.msra.gmra.mrb[20].mxu1 %vm752_vm7, %v1805_v31 }
0x1b64   :  { %3599 = vmatpush3.bf16.msra.mxu0 %v4165_v57  ;;  %3605 = vmatpush3.bf16.msra.mxu1 %v4167_v61 }
0x1b65   :  { %3600 = vmatprep.subr.bf16.mxu0 %v3868_v1  ;;  %3606 = vmatprep.subr.bf16.mxu1 %v3868_v1 }
0x1b66   :  { %3385 = vmatprep.mubr.msk.f32.mxu0 %vm3869_vm0, %v3870_v6  ;;  %3396 = vmatprep.mubr.msk.f32.mxu1 %vm3869_vm0, %v3870_v6 }
0x1b68   :  { %3602 = vmatpush3.bf16.msra.mxu0 %v4170_v0  ;;  %3608 = vmatpush3.bf16.msra.mxu1 %v4174_v3 }
0x1b69   :  { %3609 = vmatprep.subr.bf16.mxu0 %v3868_v1  ;;  %3615 = vmatprep.subr.bf16.mxu1 %v3868_v1 }
0x1c36   :  { %v4220_v51 = vpop.f32.mrb[18].mxu0  ;;  %v1944_v32 = vpop.f32.mrb[20].mxu1 }
0x1c37   :  { %v1945_v33 = vadd.f32 %v4197_v15, %v1944_v32  ;;  %v3365_v34 = vpop.f32.mrb[19].mxu0  ;;  %v3376_v35 = vpop.f32.mrb[21].mxu1 }
0x1c39   :  { %1955 = vrot.lane.b32.xlu0 %v1945_v33, %s3880_s1  ;;  %v2999_v41 = vmul.f32 -1.442695, %v1945_v33 }
0x1c3b   :  { %3755 = vpow2.f32 %v2999_v41 }
0x1c45   :  { %v3756_v36 = vpop.eup %3755 }
0x1c46   :  { %v1951_v37 = vadd.f32 1.0, %v3756_v36 }
0x1c48   :  { %3757 = vrcp.f32 %v1951_v37 }
0x1c52   :  { %v3758_v38 = vpop.eup %3757 }
0x1c53   :  { %v1965_v44 = vsub.f32 1.0, %v3758_v38  ;;  %v1971_v47 = vmul.f32 %v3758_v38, %v1802_v30 }
0x1cab   :  { %v1956_v39 = vpop.permute.xlu0 %1955 }
0x1cac   :  { %v1958_v45 = vmul.f32 %v3758_v38, %v1956_v39 }
0x1cae   :  { %1960 = vrot.lane.b32.xlu1 %v1958_v45, %s3871_s2 }
0x1d20   :  { %v1961_v40 = vpop.permute.xlu1 %1960 }
0x1d21   :  { %v1963_v42 = vadd.f32 %v1961_v40, %v1945_v33 }
0x1d23   :  { %3759 = vtanh.f32 %v1963_v42 }
0x1d2d   :  { %v3760_v43 = vpop.eup %3759 }
0x1d2e   :  { %1967 = vrot.lane.b32.xlu0 %v3760_v43, %s3874_s10 }
0x1da0   :  { %v1968_v46 = vpop.permute.xlu0 %1967 }
0x1da1   :  { %v1970_v49 = vmul.f32 %v1968_v46, %v1965_v44 }
0x1da3   :  { %v1972_v50 = vadd.f32 %v1971_v47, %v1970_v49 }
0x1da5   :  { %1974 = vrot.lane.b32.xlu1 %v1972_v50, %s3874_s10 }
0x1e17   :  { %v1975_v52 = vpop.permute.xlu1 %1974 }
0x1e18   :  { %3386 = vmatmul.mubr.msk.f32.vlgmr.msra.gmra.mrb[20].mxu0 %vm752_vm7, %v1975_v52  ;;  %3397 = vmatmul.mubr.msk.f32.vlgmr.msra.gmra.mrb[22].mxu1 %vm752_vm7, %v1975_v52 }
0x1e19   :  { %3611 = vmatpush3.bf16.msra.mxu0 %v4165_v57  ;;  %3617 = vmatpush3.bf16.msra.mxu1 %v4167_v61 }
0x1e1a   :  { %3612 = vmatprep.subr.bf16.mxu0 %v3868_v1  ;;  %3618 = vmatprep.subr.bf16.mxu1 %v3868_v1 }
0x1e1b   :  { %3407 = vmatprep.mubr.msk.f32.mxu0 %vm3869_vm0, %v3870_v6  ;;  %3418 = vmatprep.mubr.msk.f32.mxu1 %vm3869_vm0, %v3870_v6 }
0x1e1d   :  { %3614 = vmatpush3.bf16.msra.mxu0 %v4170_v0  ;;  %3620 = vmatpush3.bf16.msra.mxu1 %v4174_v3 }
0x1e1e   :  { %3621 = vmatprep.subr.bf16.mxu0 %v3868_v1  ;;  %3627 = vmatprep.subr.bf16.mxu1 %v3868_v1 }
0x1eeb   :  { %v4241_v8 = vpop.f32.mrb[20].mxu0  ;;  %v2114_v48 = vpop.f32.mrb[22].mxu1 }
0x1eec   :  { %v2115_v54 = vadd.f32 %v4197_v15, %v2114_v48  ;;  %v3387_v55 = vpop.f32.mrb[21].mxu0  ;;  %v3398_v56 = vpop.f32.mrb[23].mxu1 }
0x1eee   :  { %2125 = vrot.lane.b32.xlu0 %v2115_v54, %s3880_s1  ;;  %v3002_v58 = vmul.f32 -1.442695, %v2115_v54 }
0x1ef0   :  { %3761 = vpow2.f32 %v3002_v58 }
0x1efa   :  { %v3762_v59 = vpop.eup %3761 }
0x1efb   :  { %v2121_v60 = vadd.f32 1.0, %v3762_v59 }
0x1efd   :  { %3763 = vrcp.f32 %v2121_v60 }
0x1f07   :  { %v3764_v62 = vpop.eup %3763 }
0x1f08   :  { %v2135_v13 = vsub.f32 1.0, %v3764_v62  ;;  %v2141_v14 = vmul.f32 %v3764_v62, %v1972_v50 }
0x1f60   :  { %v2126_v63 = vpop.permute.xlu0 %2125 }
0x1f61   :  { %v2128_v4 = vmul.f32 %v3764_v62, %v2126_v63 }
0x1f63   :  { %2130 = vrot.lane.b32.xlu1 %v2128_v4, %s3871_s2 }
0x1fd5   :  { %v2131_v9 = vpop.permute.xlu1 %2130 }
0x1fd6   :  { %v2133_v11 = vadd.f32 %v2131_v9, %v2115_v54 }
0x1fd8   :  { %3765 = vtanh.f32 %v2133_v11 }
0x1fe2   :  { %v3766_v12 = vpop.eup %3765 }
0x1fe3   :  { %2137 = vrot.lane.b32.xlu0 %v3766_v12, %s3874_s10 }
0x2055   :  { %v2138_v53 = vpop.permute.xlu0 %2137 }
0x2056   :  { %v2140_v17 = vmul.f32 %v2138_v53, %v2135_v13 }
0x2058   :  { %v2142_v18 = vadd.f32 %v2141_v14, %v2140_v17 }
0x205a   :  { %2144 = vrot.lane.b32.xlu1 %v2142_v18, %s3874_s10 }
0x20cc   :  { %v2145_v2 = vpop.permute.xlu1 %2144 }
0x20cd   :  { %3408 = vmatmul.mubr.msk.f32.vlgmr.msra.gmra.mrb[22].mxu0 %vm752_vm7, %v2145_v2  ;;  %3419 = vmatmul.mubr.msk.f32.vlgmr.msra.gmra.mrb[24].mxu1 %vm752_vm7, %v2145_v2 }
0x20ce   :  { %3623 = vmatpush3.bf16.msra.mxu0 %v4165_v57  ;;  %3629 = vmatpush3.bf16.msra.mxu1 %v4167_v61 }
0x20cf   :  { %3624 = vmatprep.subr.bf16.mxu0 %v3868_v1  ;;  %3630 = vmatprep.subr.bf16.mxu1 %v3868_v1 }
0x20d0   :  { %3429 = vmatprep.mubr.msk.f32.mxu0 %vm3869_vm0, %v3870_v6  ;;  %3440 = vmatprep.mubr.msk.f32.mxu1 %vm3869_vm0, %v3870_v6 }
0x20d2   :  { %3626 = vmatpush3.bf16.msra.mxu0 %v4170_v0  ;;  %3632 = vmatpush3.bf16.msra.mxu1 %v4174_v3 }
0x20d3   :  { %3633 = vmatprep.subr.bf16.mxu0 %v3868_v1  ;;  %3639 = vmatprep.subr.bf16.mxu1 %v3868_v1 }
0x21a0   :  { %v4262_v19 = vpop.f32.mrb[22].mxu0  ;;  %v2284_v20 = vpop.f32.mrb[24].mxu1 }
0x21a1   :  { %v2285_v21 = vadd.f32 %v4197_v15, %v2284_v20  ;;  %v3409_v22 = vpop.f32.mrb[23].mxu0  ;;  %v3420_v7 = vpop.f32.mrb[25].mxu1 }
0x21a3   :  { %2295 = vrot.lane.b32.xlu0 %v2285_v21, %s3880_s1  ;;  %v3005_v23 = vmul.f32 -1.442695, %v2285_v21 }
0x21a5   :  { %3767 = vpow2.f32 %v3005_v23 }
0x21af   :  { %v3768_v24 = vpop.eup %3767 }
0x21b0   :  { %v2291_v25 = vadd.f32 1.0, %v3768_v24 }
0x21b2   :  { %3769 = vrcp.f32 %v2291_v25 }
0x21bc   :  { %v3770_v5 = vpop.eup %3769 }
0x21bd   :  { %v2305_v30 = vsub.f32 1.0, %v3770_v5  ;;  %v2311_v32 = vmul.f32 %v3770_v5, %v2142_v18 }
0x2215   :  { %v2296_v10 = vpop.permute.xlu0 %2295 }
0x2216   :  { %v2298_v26 = vmul.f32 %v3770_v5, %v2296_v10 }
0x2218   :  { %2300 = vrot.lane.b32.xlu1 %v2298_v26, %s3871_s2 }
0x228a   :  { %v2301_v27 = vpop.permute.xlu1 %2300 }
0x228b   :  { %v2303_v29 = vadd.f32 %v2301_v27, %v2285_v21 }
0x228d   :  { %3771 = vtanh.f32 %v2303_v29 }
0x2297   :  { %v3772_v28 = vpop.eup %3771 }
0x2298   :  { %2307 = vrot.lane.b32.xlu0 %v3772_v28, %s3874_s10 }
0x230a   :  { %v2308_v31 = vpop.permute.xlu0 %2307 }
0x230b   :  { %v2310_v33 = vmul.f32 %v2308_v31, %v2305_v30 }
0x230d   :  { %v2312_v34 = vadd.f32 %v2311_v32, %v2310_v33 }
0x230f   :  { %2314 = vrot.lane.b32.xlu1 %v2312_v34, %s3874_s10 }
0x2381   :  { %v2315_v35 = vpop.permute.xlu1 %2314 }
0x2382   :  { %3430 = vmatmul.mubr.msk.f32.vlgmr.msra.gmra.mrb[24].mxu0 %vm752_vm7, %v2315_v35  ;;  %3441 = vmatmul.mubr.msk.f32.vlgmr.msra.gmra.mrb[26].mxu1 %vm752_vm7, %v2315_v35 }
0x2383   :  { %3635 = vmatpush3.bf16.msra.mxu0 %v4165_v57  ;;  %3641 = vmatpush3.bf16.msra.mxu1 %v4167_v61 }
0x2384   :  { %3636 = vmatprep.subr.bf16.mxu0 %v3868_v1  ;;  %3642 = vmatprep.subr.bf16.mxu1 %v3868_v1 }
0x2385   :  { %3451 = vmatprep.mubr.msk.f32.mxu0 %vm3869_vm0, %v3870_v6  ;;  %3462 = vmatprep.mubr.msk.f32.mxu1 %vm3869_vm0, %v3870_v6 }
0x2387   :  { %3638 = vmatpush3.bf16.msra.mxu0 %v4170_v0  ;;  %3644 = vmatpush3.bf16.msra.mxu1 %v4174_v3 }
0x2388   :  { %3645 = vmatprep.subr.bf16.mxu0 %v3868_v1  ;;  %3651 = vmatprep.subr.bf16.mxu1 %v3868_v1 }
0x2455   :  { %v4283_v41 = vpop.f32.mrb[24].mxu0  ;;  %v2454_v36 = vpop.f32.mrb[26].mxu1 }
0x2456   :  { %v2455_v37 = vadd.f32 %v4197_v15, %v2454_v36  ;;  %v3431_v38 = vpop.f32.mrb[25].mxu0  ;;  %v3442_v39 = vpop.f32.mrb[27].mxu1 }
0x2458   :  { %2465 = vrot.lane.b32.xlu0 %v2455_v37, %s3880_s1  ;;  %v3008_v45 = vmul.f32 -1.442695, %v2455_v37 }
0x245a   :  { %3773 = vpow2.f32 %v3008_v45 }
0x2464   :  { %v3774_v40 = vpop.eup %3773 }
0x2465   :  { %v2461_v42 = vadd.f32 1.0, %v3774_v40 }
0x2467   :  { %3775 = vrcp.f32 %v2461_v42 }
0x2471   :  { %v3776_v43 = vpop.eup %3775 }
0x2472   :  { %v2475_v52 = vsub.f32 1.0, %v3776_v43  ;;  %v2481_v54 = vmul.f32 %v3776_v43, %v2312_v34 }
0x24ca   :  { %v2466_v44 = vpop.permute.xlu0 %2465 }
0x24cb   :  { %v2468_v46 = vmul.f32 %v3776_v43, %v2466_v44 }
0x24cd   :  { %2470 = vrot.lane.b32.xlu1 %v2468_v46, %s3871_s2 }
0x253f   :  { %v2471_v47 = vpop.permute.xlu1 %2470 }
0x2540   :  { %v2473_v49 = vadd.f32 %v2471_v47, %v2455_v37 }
0x2542   :  { %3777 = vtanh.f32 %v2473_v49 }
0x254c   :  { %v3778_v50 = vpop.eup %3777 }
0x254d   :  { %2477 = vrot.lane.b32.xlu0 %v3778_v50, %s3874_s10 }
0x25bf   :  { %v2478_v48 = vpop.permute.xlu0 %2477 }
0x25c0   :  { %v2480_v55 = vmul.f32 %v2478_v48, %v2475_v52 }
0x25c2   :  { %v2482_v56 = vadd.f32 %v2481_v54, %v2480_v55 }
0x25c4   :  { %2484 = vrot.lane.b32.xlu1 %v2482_v56, %s3874_s10 }
0x2636   :  { %v2485_v58 = vpop.permute.xlu1 %2484 }
0x2637   :  { %3452 = vmatmul.mubr.msk.f32.vlgmr.msra.gmra.mrb[26].mxu0 %vm752_vm7, %v2485_v58  ;;  %3463 = vmatmul.mubr.msk.f32.vlgmr.msra.gmra.mrb[28].mxu1 %vm752_vm7, %v2485_v58 }
0x2638   :  { %3647 = vmatpush3.bf16.msra.mxu0 %v4165_v57  ;;  %3653 = vmatpush3.bf16.msra.mxu1 %v4167_v61 }
0x2639   :  { %3648 = vmatprep.subr.bf16.mxu0 %v3868_v1  ;;  %3654 = vmatprep.subr.bf16.mxu1 %v3868_v1 }
0x263a   :  { %3473 = vmatprep.mubr.msk.f32.mxu0 %vm3869_vm0, %v3870_v6  ;;  %3484 = vmatprep.mubr.msk.f32.mxu1 %vm3869_vm0, %v3870_v6 }
0x263c   :  { %3650 = vmatpush3.bf16.msra.mxu0 %v4170_v0  ;;  %3656 = vmatpush3.bf16.msra.mxu1 %v4174_v3 }
0x263d   :  { %3657 = vmatprep.subr.bf16.mxu0 %v3868_v1 }
0x270a   :  { %v2554_v59 = vpop.f32.mrb[26].mxu0  ;;  %v2624_v60 = vpop.f32.mrb[28].mxu1 }
0x270b   :  { %v2625_v61 = vadd.f32 %v4197_v15, %v2624_v60  ;;  %v3453_v62 = vpop.f32.mrb[27].mxu0  ;;  %v3464_v63 = vpop.f32.mrb[29].mxu1 }
0x270d   :  { %2635 = vrot.lane.b32.xlu0 %v2625_v61, %s3880_s1  ;;  %v3011_v4 = vmul.f32 -1.442695, %v2625_v61 }
0x270f   :  { %3779 = vpow2.f32 %v3011_v4 }
0x2719   :  { %v3780_v9 = vpop.eup %3779 }
0x271a   :  { %v2631_v11 = vadd.f32 1.0, %v3780_v9 }
0x271c   :  { %3781 = vrcp.f32 %v2631_v11 }
0x2726   :  { %v3782_v12 = vpop.eup %3781 }
0x2727   :  { %v2645_v18 = vsub.f32 1.0, %v3782_v12  ;;  %v2651_v20 = vmul.f32 %v3782_v12, %v2482_v56 }
0x277f   :  { %v2636_v13 = vpop.permute.xlu0 %2635 }
0x2780   :  { %v2638_v53 = vmul.f32 %v3782_v12, %v2636_v13 }
0x2782   :  { %2640 = vrot.lane.b32.xlu1 %v2638_v53, %s3871_s2 }
0x27f4   :  { %v2641_v3 = vpop.permute.xlu1 %2640 }
0x27f5   :  { %v2643_v14 = vadd.f32 %v2641_v3, %v2625_v61 }
0x27f7   :  { %3783 = vtanh.f32 %v2643_v14 }
0x2801   :  { %v3784_v17 = vpop.eup %3783 }
0x2802   :  { %2647 = vrot.lane.b32.xlu0 %v3784_v17, %s3874_s10 }
0x2874   :  { %v2648_v2 = vpop.permute.xlu0 %2647 }
0x2875   :  { %v2650_v21 = vmul.f32 %v2648_v2, %v2645_v18 }
0x2877   :  { %v2652_v22 = vadd.f32 %v2651_v20, %v2650_v21 }
0x2879   :  { %2654 = vrot.lane.b32.xlu1 %v2652_v22, %s3874_s10 }
0x28eb   :  { %v2655_v7 = vpop.permute.xlu1 %2654 }
0x28ec   :  { %3474 = vmatmul.mubr.msk.f32.vlgmr.msra.gmra.mrb[28].mxu0 %vm752_vm7, %v2655_v7  ;;  %3485 = vmatmul.mubr.msk.f32.vlgmr.msra.gmra.mrb[30].mxu1 %vm752_vm7, %v2655_v7 }
0x28ed   :  { %3659 = vmatpush3.bf16.msra.mxu0 %v4165_v57  ;;  %3495 = vmatprep.mubr.msk.f32.mxu0 %vm3869_vm0, %v3870_v6  ;;  %vm2936_vm0 = vcmask 916480  }
0x28ee   :  { %3660 = vmatprep.subr.bf16.mxu0 %v3868_v1 }
0x28f1   :  { %3662 = vmatpush3.bf16.msra.mxu0 %v4170_v0 }
0x29bf   :  { %v2724_v23 = vpop.f32.mrb[28].mxu0  ;;  %v2794_v24 = vpop.f32.mrb[30].mxu1 }
0x29c0   :  { %v2795_v25 = vadd.f32 %v4197_v15, %v2794_v24  ;;  %v3475_v5 = vpop.f32.mrb[29].mxu0  ;;  %v3486_v10 = vpop.f32.mrb[31].mxu1  ;;  %v2959_v15 = vld [vmem:[#allocation5 + $0xac] ss:$0 sm:$0xff] }
0x29c1   :  { %v1875_v31 = vadd.f32 %v2959_v15, %v4220_v51  ;;  %v2215_v32 = vadd.f32 %v2959_v15, %v4262_v19  ;;  %v2555_v33 = vadd.f32 %v2959_v15, %v2554_v59  ;;  %v2045_v39 = vadd.f32 %v2959_v15, %v4241_v8 }
0x29c2   :  { %2805 = vrot.lane.b32.xlu0 %v2795_v25, %s3880_s1  ;;  %v3014_v26 = vmul.f32 -1.442695, %v2795_v25  ;;  %v2385_v51 = vadd.f32 %v2959_v15, %v4283_v41  ;;  %v2725_v19 = vadd.f32 %v2959_v15, %v2724_v23  ;;  %v1705_v8 = vadd.f32 %v2959_v15, %v4199_v16 }
0x29c4   :  { %3785 = vpow2.f32 %v3014_v26 }
0x29ce   :  { %v3786_v27 = vpop.eup %3785 }
0x29cf   :  { %v2801_v29 = vadd.f32 1.0, %v3786_v27 }
0x29d1   :  { %3787 = vrcp.f32 %v2801_v29 }
0x29db   :  { %v3788_v57 = vpop.eup %3787 }
0x29dc   :  { %v2815_v34 = vsub.f32 1.0, %v3788_v57  ;;  %v2821_v36 = vmul.f32 %v3788_v57, %v2652_v22 }
0x2a34   :  { %v2806_v28 = vpop.permute.xlu0 %2805 }
0x2a35   :  { %v2808_v6 = vmul.f32 %v3788_v57, %v2806_v28 }
0x2a37   :  { %2810 = vrot.lane.b32.xlu1 %v2808_v6, %s3871_s2 }
0x2aa9   :  { %v2811_v1 = vpop.permute.xlu1 %2810 }
0x2aaa   :  { %v2813_v0 = vadd.f32 %v2811_v1, %v2795_v25 }
0x2aac   :  { %3789 = vtanh.f32 %v2813_v0 }
0x2ab6   :  { %v3790_v30 = vpop.eup %3789 }
0x2ab7   :  { %2817 = vrot.lane.b32.xlu0 %v3790_v30, %s3874_s10 }
0x2abb   :  { %2899 = vrot.lane.b32.xlu0 %v1875_v31, %s3881_s13 }
0x2abf   :  { %2907 = vrot.lane.b32.xlu0 %v2215_v32, %s3882_s14 }
0x2ac3   :  { %2915 = vrot.lane.b32.xlu0 %v2555_v33, %s3883_s15 }
0x2b29   :  { %v2818_v35 = vpop.permute.xlu0 %2817 }
0x2b2a   :  { %v2820_v37 = vmul.f32 %v2818_v35, %v2815_v34 }
0x2b2c   :  { %v2822_v38 = vadd.f32 %v2821_v36, %v2820_v37 }
0x2b2d   :  { %v2900_v44 = vpop.permute.xlu0 %2899 }
0x2b2e   :  { %2824 = vrot.lane.b32.xlu1 %v2822_v38, %s3874_s10  ;;  %v2926_v41 = vsel %vm1458_vm11, %v1705_v8, %v2900_v44 }
0x2b31   :  { %v2908_v47 = vpop.permute.xlu0 %2907 }
0x2b32   :  { %2903 = vrot.lane.b32.xlu1 %v2045_v39, %s3880_s1 }
0x2b35   :  { %v2916_v48 = vpop.permute.xlu0 %2915 }
0x2b36   :  { %2911 = vrot.lane.b32.xlu1 %v2385_v51, %s3871_s2 }
0x2b3a   :  { %2919 = vrot.lane.b32.xlu1 %v2725_v19, %s3874_s10 }
0x2ba0   :  { %v2825_v45 = vpop.permute.xlu1 %2824 }
0x2ba1   :  { %3496 = vmatmul.mubr.msk.f32.vlgmr.msra.gmra.mrb[30].mxu0 %vm752_vm7, %v2825_v45 }
0x2ba4   :  { %v2904_v46 = vpop.permute.xlu1 %2903 }
0x2ba5   :  { %v2927_v50 = vsel %vm752_vm7, %v2926_v41, %v2904_v46 }
0x2ba6   :  { %v2929_v52 = vsel %vm2928_vm12, %v2927_v50, %v2908_v47 }
0x2ba8   :  { %v2912_v49 = vpop.permute.xlu1 %2911 }
0x2ba9   :  { %v2931_v54 = vsel %vm2930_vm13, %v2929_v52, %v2912_v49 }
0x2baa   :  { %v2933_v56 = vsel %vm2932_vm14, %v2931_v54, %v2916_v48 }
0x2bac   :  { %v2920_v55 = vpop.permute.xlu1 %2919 }
0x2bad   :  { %v2935_v58 = vsel %vm2934_vm15, %v2933_v56, %v2920_v55 }
0x2c74   :  { %v2894_v40 = vpop.f32.mrb[30].mxu0 }
0x2c75   :  { %v2895_v42 = vadd.f32 %v2959_v15, %v2894_v40  ;;  %v3497_v43 = vpop.f32.mrb[31].mxu0 }
0x2c77   :  { %2923 = vrot.lane.b32.xlu0 %v2895_v42, %s3884_s16 }
0x2ce9   :  { %v2924_v16 = vpop.permute.xlu0 %2923 }
0x2cea   :  { %v2937_v59 = vsel %vm2936_vm0, %v2935_v58, %v2924_v16 }
0x2ceb   :  { %2938 = vst [vmem:[#allocation7] sm:$0x3] %v2937_v59 }
0x2cec   :  { %3846 = shalt.err (!%p3843_p6)
}
0x2ced   :  { %s3847_s22 = scalar_lea.hbm %s4346_s3, 32 }
0x2cee   :  { %p3848_p7 = scmp.ne.s32.totalorder %s4346_s3, %s3847_s22  ;;  %p3851_p8 = scmp.lt.u32.totalorder %s3847_s22, %s4346_s3 }
0x2cf0   :  { %p3853_p9 = pnand %p3851_p8, %p3848_p7 }
0x2cf2   :  { %3856 = shalt.err (!%p3853_p9)
}
0x2cf3   :  { %2948 = dma.vmem_to_hbm [thread:$0]  %s2946_s18, 32, %s4346_s3, [#allocation4]  }
0x2cf4   :  { %3861 = dma.done.wait [#allocation4], 32  }
0x2cf5   :  { %3862 = vsyncadd [#allocation4], 4294967264 }
0x2cf6   :  { %2952 = vsyncpa [#allocation3], 1 }
0x2cf7   :  { %2953 = vsyncpa [#allocation6], 1 }
0x2cf8   :  { %2954 = vsyncpa [#allocation4], 1 }

</bundles_post_ra>
